<compile_context>
chip_gen: v7x
topology: tpu7x:2x2x1
jax: 0.10.0
libtpu: 0.0.40
codegen_flags: <defaults>
</compile_context>

<pallas_src>
import math

import jax
import jax.numpy as jnp
from jax.experimental import pallas as pl
from jax.experimental.pallas import tpu as pltpu

INPUT_DIM = 784
HIDDEN_DIM = 400
LATENT_DIM = 20
BATCH = 8

LANE = 128
SUBLANE = 8
BF16_PACK = 16  # bf16 sublane packing


def _round_up(x, m):
    return (x + m - 1) // m * m


HID_PAD = _round_up(HIDDEN_DIM, LANE)        # 512
LAT_PAD = _round_up(LATENT_DIM, LANE)        # 128  (lane-aligned mu|logvar split, eps width)
LAT_DEC = _round_up(LATENT_DIM, BF16_PACK)   # 32   (decoder contraction dim; no lane pad needed)
OUT_PAD = _round_up(INPUT_DIM, LANE)         # 896  (recon kept lane-dense -> unmasked stores)
# NOTE: the x/w1 contraction dim deliberately stays at 784 (not padded to 896).


def vae_kernel(x_ref, eps_ref,
               w1_ref, b1_ref, wenc_ref, benc_ref,
               wd1_ref, bd1_ref, wd2_ref, bd2_ref,
               recon_ref, mu_ref, logvar_ref):
    # ---- encoder: h = relu(x @ w1 + b1) ----  (x already bf16, K = 784, no pad)
    h = jnp.dot(x_ref[...], w1_ref[...],
                preferred_element_type=jnp.float32) + b1_ref[...]
    h = jnp.maximum(h, 0.0)
    h_bf = h.astype(jnp.bfloat16)

    # ---- fused [mu | logvar] head; split is lane-aligned (LAT_PAD == 128) ----
    stats = jnp.dot(h_bf, wenc_ref[...],
                    preferred_element_type=jnp.float32) + benc_ref[...]
    mu = stats[:, :LAT_PAD]
    logvar = stats[:, LAT_PAD:]

    # ---- reparameterize: z = mu + exp(0.5 * logvar) * eps ----
    std = jnp.exp(0.5 * logvar)          # padded lanes: exp(0) = 1
    z = mu + std * eps_ref[...]          # padded eps lanes are 0 -> z stays 0 there

    # ---- decoder ----
    # only the first LAT_DEC (=32) latent lanes carry data; wd1 K dim is shrunk to match
    z_dec = z[:, :LAT_DEC].astype(jnp.bfloat16)
    hd = jnp.dot(z_dec, wd1_ref[...],
                 preferred_element_type=jnp.float32) + bd1_ref[...]
    hd = jnp.maximum(hd, 0.0)

    logits = jnp.dot(hd.astype(jnp.bfloat16), wd2_ref[...],
                     preferred_element_type=jnp.float32) + bd2_ref[...]
    # sigmoid(x) = 0.5 * (1 + tanh(0.5 x)): single EUP push, exact math
    recon = 0.5 * (1.0 + jnp.tanh(0.5 * logits))

    recon_ref[...] = recon.astype(recon_ref.dtype)   # bf16 output, halves writeback bytes
    mu_ref[...] = mu
    logvar_ref[...] = logvar


def _pad2(a, rows, cols):
    return jnp.pad(a, ((0, rows - a.shape[0]), (0, cols - a.shape[1])))


def _batch_tile_cap():
    # v5e: 128-wide MXU -> 128-row batch tile; v6e/v7x: 256-wide MXU -> 256-row tile.
    try:
        kind = jax.devices()[0].device_kind.lower()
    except Exception:
        return 256
    if "v5 lite" in kind or "v5e" in kind:
        return 128
    return 256


@jax.jit
def vae_forward(x, eps, params):
    (w1, b1, wmu, bmu, wlv, blv, wd1, bd1, wd2, bd2) = params
    B = x.shape[0]

    tb = min(_batch_tile_cap(), _round_up(B, SUBLANE))
    b_pad = _round_up(B, tb)
    grid = (b_pad // tb,)

    # --- activations: x in bf16 (only consumed via the bf16 matmul), eps stays f32 ---
    x_p = _pad2(x, b_pad, INPUT_DIM).astype(jnp.bfloat16)            # (b_pad, 784) bf16
    eps_p = _pad2(eps.astype(jnp.float32), b_pad, LAT_PAD)           # (b_pad, 128) f32

    # --- weights bf16 (DMA-bound), biases f32 ---
    w1_p = _pad2(w1, INPUT_DIM, HID_PAD).astype(jnp.bfloat16)        # (784, 512)
    b1_p = _pad2(b1, 1, HID_PAD).astype(jnp.float32)
    wenc = jnp.concatenate(
        [_pad2(wmu, HID_PAD, LAT_PAD), _pad2(wlv, HID_PAD, LAT_PAD)], axis=1
    ).astype(jnp.bfloat16)                                           # (512, 256)
    benc = jnp.concatenate(
        [_pad2(bmu, 1, LAT_PAD), _pad2(blv, 1, LAT_PAD)], axis=1
    ).astype(jnp.float32)
    wd1_p = _pad2(wd1, LAT_DEC, HID_PAD).astype(jnp.bfloat16)        # (32, 512)
    bd1_p = _pad2(bd1, 1, HID_PAD).astype(jnp.float32)
    wd2_p = _pad2(wd2, HID_PAD, OUT_PAD).astype(jnp.bfloat16)        # (512, 896)
    bd2_p = _pad2(bd2, 1, OUT_PAD).astype(jnp.float32)

    def batch_spec(cols):
        return pl.BlockSpec((tb, cols), lambda i: (i, 0))

    def resident_spec(a):
        # full-array block, constant block index -> stays resident in VMEM across the grid
        return pl.BlockSpec(a.shape, lambda i: (0, 0))

    in_specs = [
        batch_spec(INPUT_DIM),     # x  (full-width 784 block: legal, no lane pad)
        batch_spec(LAT_PAD),       # eps
        resident_spec(w1_p), resident_spec(b1_p),
        resident_spec(wenc), resident_spec(benc),
        resident_spec(wd1_p), resident_spec(bd1_p),
        resident_spec(wd2_p), resident_spec(bd2_p),
    ]
    out_specs = (batch_spec(OUT_PAD), batch_spec(LAT_PAD), batch_spec(LAT_PAD))
    out_shapes = (
        jax.ShapeDtypeStruct((b_pad, OUT_PAD), jnp.bfloat16),   # recon (padded, bf16)
        jax.ShapeDtypeStruct((b_pad, LAT_PAD), jnp.float32),    # mu (padded)
        jax.ShapeDtypeStruct((b_pad, LAT_PAD), jnp.float32),    # logvar (padded)
    )

    # Megacore gating: only shard the batch grid across TensorCores when the batch is large
    # enough that activation DMA / compute outweigh duplicating the resident weight fill.
    dim_sem = ("parallel",) if b_pad >= 512 else ("arbitrary",)

    flops = 2 * b_pad * (INPUT_DIM * HID_PAD + HID_PAD * 2 * LAT_PAD
                         + LAT_DEC * HID_PAD + HID_PAD * OUT_PAD)
    transcendentals = b_pad * (LAT_PAD + OUT_PAD)        # exp(std) + tanh(sigmoid)
    operands = (x_p, eps_p, w1_p, b1_p, wenc, benc, wd1_p, bd1_p, wd2_p, bd2_p)
    bytes_accessed = sum(int(a.size) * a.dtype.itemsize for a in operands) + sum(
        math.prod(s.shape) * jnp.dtype(s.dtype).itemsize for s in out_shapes)

    recon_p, mu_p, logvar_p = pl.pallas_call(
        vae_kernel,
        out_shape=out_shapes,
        grid=grid,
        in_specs=in_specs,
        out_specs=out_specs,
        compiler_params=pltpu.CompilerParams(
            dimension_semantics=dim_sem,
            vmem_limit_bytes=32 << 20,
        ),
        cost_estimate=pl.CostEstimate(
            flops=flops,
            transcendentals=transcendentals,
            bytes_accessed=bytes_accessed,
        ),
    )(*operands)

    # slice padding away (padded recon cols hold sigmoid(0)=0.5 and are discarded here)
    recon = recon_p[:B, :INPUT_DIM].astype(jnp.float32)
    mu = mu_p[:B, :LATENT_DIM]
    logvar = logvar_p[:B, :LATENT_DIM]
    return recon, mu, logvar


def init_params(key):
    """Deterministic init mimicking PyTorch Linear default (uniform +/- 1/sqrt(fan_in))."""
    def linear(k, fan_in, fan_out):
        kw, kb = jax.random.split(k)
        bound = 1.0 / jnp.sqrt(float(fan_in))
        w = jax.random.uniform(kw, (fan_in, fan_out), jnp.float32, -bound, bound)
        b = jax.random.uniform(kb, (1, fan_out), jnp.float32, -bound, bound)
        return w, b

    k1, k2, k3, k4, k5 = jax.random.split(key, 5)
    w1, b1 = linear(k1, INPUT_DIM, HIDDEN_DIM)     # encoder.fc1
    wmu, bmu = linear(k2, HIDDEN_DIM, LATENT_DIM)  # encoder.fc_mu
    wlv, blv = linear(k3, HIDDEN_DIM, LATENT_DIM)  # encoder.fc_logvar
    wd1, bd1 = linear(k4, LATENT_DIM, HIDDEN_DIM)  # decoder.fc
    wd2, bd2 = linear(k5, HIDDEN_DIM, INPUT_DIM)   # decoder.fc_out
    return (w1, b1, wmu, bmu, wlv, blv, wd1, bd1, wd2, bd2)


def vae_reference(x, eps, params):
    """Pure-JAX f32 reference (identical math to the PyTorch module)."""
    (w1, b1, wmu, bmu, wlv, blv, wd1, bd1, wd2, bd2) = params
    h = jnp.maximum(x @ w1 + b1, 0.0)
    mu = h @ wmu + bmu
    logvar = h @ wlv + blv
    z = mu + jnp.exp(0.5 * logvar) * eps
    hd = jnp.maximum(z @ wd1 + bd1, 0.0)
    recon = jax.nn.sigmoid(hd @ wd2 + bd2)
    return recon, mu, logvar


if __name__ == "__main__":
    key = jax.random.PRNGKey(0)
    kx, keps, kp = jax.random.split(key, 3)

    x = jax.random.uniform(kx, (BATCH, INPUT_DIM), jnp.float32)      # normalized pixels
    eps = jax.random.normal(keps, (BATCH, LATENT_DIM), jnp.float32)  # reparameterization noise
    params = init_params(kp)

    recon, mu, logvar = jax.block_until_ready(vae_forward(x, eps, params))

    # sanity check against pure-JAX f32 reference (bf16 weights/x/recon -> loosened tolerances)
    r_ref, mu_ref, lv_ref = vae_reference(x, eps, params)
    assert recon.shape == (BATCH, INPUT_DIM)
    assert mu.shape == (BATCH, LATENT_DIM) and logvar.shape == (BATCH, LATENT_DIM)
    assert jnp.allclose(recon, r_ref, atol=2e-2), "recon mismatch"
    assert jnp.allclose(mu, mu_ref, atol=3e-2), "mu mismatch"
    assert jnp.allclose(logvar, lv_ref, atol=3e-2), "logvar mismatch"

    print("KERNEL_OK")
</pallas_src>

<mosaic_0001>
module attributes {stable_mosaic.version = 11 : i64} {
  func.func @vae_kernel(%arg0: i32, %arg1: memref<8x784xbf16, #tpu.memory_space<vmem>>, %arg2: memref<8x128xf32, #tpu.memory_space<vmem>>, %arg3: memref<784x512xbf16, #tpu.memory_space<vmem>>, %arg4: memref<1x512xf32, #tpu.memory_space<vmem>>, %arg5: memref<512x256xbf16, #tpu.memory_space<vmem>>, %arg6: memref<1x256xf32, #tpu.memory_space<vmem>>, %arg7: memref<32x512xbf16, #tpu.memory_space<vmem>>, %arg8: memref<1x512xf32, #tpu.memory_space<vmem>>, %arg9: memref<512x896xbf16, #tpu.memory_space<vmem>>, %arg10: memref<1x896xf32, #tpu.memory_space<vmem>>, %arg11: memref<8x896xbf16, #tpu.memory_space<vmem>>, %arg12: memref<8x128xf32, #tpu.memory_space<vmem>>, %arg13: memref<8x128xf32, #tpu.memory_space<vmem>>) attributes {dimension_semantics = [#tpu.dimension_semantics<arbitrary>], iteration_bounds = array<i64: 1>, scalar_prefetch = 0 : i64, scratch_operands = 0 : i64, tpu.core_type = #tpu.core_type<tc>, window_params = [{transform_indices = @transform_0, window_bounds = array<i64: 8, 784>}, {transform_indices = @transform_1, window_bounds = array<i64: 8, 128>}, {pipeline_mode = #tpu.pipeline_mode<synchronous>, transform_indices = @transform_2, window_bounds = array<i64: 784, 512>}, {pipeline_mode = #tpu.pipeline_mode<synchronous>, transform_indices = @transform_3, window_bounds = array<i64: 1, 512>}, {pipeline_mode = #tpu.pipeline_mode<synchronous>, transform_indices = @transform_4, window_bounds = array<i64: 512, 256>}, {pipeline_mode = #tpu.pipeline_mode<synchronous>, transform_indices = @transform_5, window_bounds = array<i64: 1, 256>}, {pipeline_mode = #tpu.pipeline_mode<synchronous>, transform_indices = @transform_6, window_bounds = array<i64: 32, 512>}, {pipeline_mode = #tpu.pipeline_mode<synchronous>, transform_indices = @transform_7, window_bounds = array<i64: 1, 512>}, {pipeline_mode = #tpu.pipeline_mode<synchronous>, transform_indices = @transform_8, window_bounds = array<i64: 512, 896>}, {pipeline_mode = #tpu.pipeline_mode<synchronous>, transform_indices = @transform_9, window_bounds = array<i64: 1, 896>}, {transform_indices = @transform_10, window_bounds = array<i64: 8, 896>}, {transform_indices = @transform_11, window_bounds = array<i64: 8, 128>}, {transform_indices = @transform_12, window_bounds = array<i64: 8, 128>}]} {
    %c0 = arith.constant 0 : index
    %c0_0 = arith.constant 0 : index
    %0 = vector.load %arg1[%c0, %c0_0] : memref<8x784xbf16, #tpu.memory_space<vmem>>, vector<8x784xbf16>
    %c0_1 = arith.constant 0 : index
    %c0_2 = arith.constant 0 : index
    %1 = vector.load %arg3[%c0_1, %c0_2] : memref<784x512xbf16, #tpu.memory_space<vmem>>, vector<784x512xbf16>
    %cst = arith.constant dense<0.000000e+00> : vector<8x512xf32>
    %2 = tpu.matmul %0, %1, %cst {dimension_numbers = #tpu.dot_dimension_numbers<[1], [0], [0], [1], [0, 0, 1, 1], [], []>} : vector<8x784xbf16>, vector<784x512xbf16>, vector<8x512xf32> -> vector<8x512xf32>
    %c0_3 = arith.constant 0 : index
    %c0_4 = arith.constant 0 : index
    %3 = vector.load %arg4[%c0_3, %c0_4] : memref<1x512xf32, #tpu.memory_space<vmem>>, vector<1x512xf32>
    %4 = vector.broadcast %3 : vector<1x512xf32> to vector<8x512xf32>
    %5 = arith.addf %2, %4 : vector<8x512xf32>
    %cst_5 = arith.constant 0.000000e+00 : f32
    %6 = vector.broadcast %cst_5 : f32 to vector<8x512xf32>
    %7 = arith.maximumf %5, %6 : vector<8x512xf32>
    %8 = arith.truncf %7 : vector<8x512xf32> to vector<8x512xbf16>
    %c0_6 = arith.constant 0 : index
    %c0_7 = arith.constant 0 : index
    %9 = vector.load %arg5[%c0_6, %c0_7] : memref<512x256xbf16, #tpu.memory_space<vmem>>, vector<512x256xbf16>
    %cst_8 = arith.constant dense<0.000000e+00> : vector<8x256xf32>
    %10 = tpu.matmul %8, %9, %cst_8 {dimension_numbers = #tpu.dot_dimension_numbers<[1], [0], [0], [1], [0, 0, 1, 1], [], []>} : vector<8x512xbf16>, vector<512x256xbf16>, vector<8x256xf32> -> vector<8x256xf32>
    %c0_9 = arith.constant 0 : index
    %c0_10 = arith.constant 0 : index
    %11 = vector.load %arg6[%c0_9, %c0_10] : memref<1x256xf32, #tpu.memory_space<vmem>>, vector<1x256xf32>
    %12 = vector.broadcast %11 : vector<1x256xf32> to vector<8x256xf32>
    %13 = arith.addf %10, %12 : vector<8x256xf32>
    %14 = vector.extract_strided_slice %13 {offsets = [0, 0], sizes = [8, 128], strides = [1, 1]} : vector<8x256xf32> to vector<8x128xf32>
    %15 = vector.extract_strided_slice %13 {offsets = [0, 128], sizes = [8, 128], strides = [1, 1]} : vector<8x256xf32> to vector<8x128xf32>
    %cst_11 = arith.constant 5.000000e-01 : f32
    %16 = vector.broadcast %cst_11 : f32 to vector<8x128xf32>
    %17 = arith.mulf %16, %15 : vector<8x128xf32>
    %18 = math.exp %17 : vector<8x128xf32>
    %c0_12 = arith.constant 0 : index
    %c0_13 = arith.constant 0 : index
    %19 = vector.load %arg2[%c0_12, %c0_13] : memref<8x128xf32, #tpu.memory_space<vmem>>, vector<8x128xf32>
    %20 = arith.mulf %18, %19 : vector<8x128xf32>
    %21 = arith.addf %14, %20 : vector<8x128xf32>
    %22 = vector.extract_strided_slice %21 {offsets = [0, 0], sizes = [8, 32], strides = [1, 1]} : vector<8x128xf32> to vector<8x32xf32>
    %23 = arith.truncf %22 : vector<8x32xf32> to vector<8x32xbf16>
    %c0_14 = arith.constant 0 : index
    %c0_15 = arith.constant 0 : index
    %24 = vector.load %arg7[%c0_14, %c0_15] : memref<32x512xbf16, #tpu.memory_space<vmem>>, vector<32x512xbf16>
    %cst_16 = arith.constant dense<0.000000e+00> : vector<8x512xf32>
    %25 = tpu.matmul %23, %24, %cst_16 {dimension_numbers = #tpu.dot_dimension_numbers<[1], [0], [0], [1], [0, 0, 1, 1], [], []>} : vector<8x32xbf16>, vector<32x512xbf16>, vector<8x512xf32> -> vector<8x512xf32>
    %c0_17 = arith.constant 0 : index
    %c0_18 = arith.constant 0 : index
    %26 = vector.load %arg8[%c0_17, %c0_18] : memref<1x512xf32, #tpu.memory_space<vmem>>, vector<1x512xf32>
    %27 = vector.broadcast %26 : vector<1x512xf32> to vector<8x512xf32>
    %28 = arith.addf %25, %27 : vector<8x512xf32>
    %cst_19 = arith.constant 0.000000e+00 : f32
    %29 = vector.broadcast %cst_19 : f32 to vector<8x512xf32>
    %30 = arith.maximumf %28, %29 : vector<8x512xf32>
    %31 = arith.truncf %30 : vector<8x512xf32> to vector<8x512xbf16>
    %c0_20 = arith.constant 0 : index
    %c0_21 = arith.constant 0 : index
    %32 = vector.load %arg9[%c0_20, %c0_21] : memref<512x896xbf16, #tpu.memory_space<vmem>>, vector<512x896xbf16>
    %cst_22 = arith.constant dense<0.000000e+00> : vector<8x896xf32>
    %33 = tpu.matmul %31, %32, %cst_22 {dimension_numbers = #tpu.dot_dimension_numbers<[1], [0], [0], [1], [0, 0, 1, 1], [], []>} : vector<8x512xbf16>, vector<512x896xbf16>, vector<8x896xf32> -> vector<8x896xf32>
    %c0_23 = arith.constant 0 : index
    %c0_24 = arith.constant 0 : index
    %34 = vector.load %arg10[%c0_23, %c0_24] : memref<1x896xf32, #tpu.memory_space<vmem>>, vector<1x896xf32>
    %35 = vector.broadcast %34 : vector<1x896xf32> to vector<8x896xf32>
    %36 = arith.addf %33, %35 : vector<8x896xf32>
    %cst_25 = arith.constant 5.000000e-01 : f32
    %37 = vector.broadcast %cst_25 : f32 to vector<8x896xf32>
    %38 = arith.mulf %37, %36 : vector<8x896xf32>
    %39 = math.tanh %38 : vector<8x896xf32>
    %cst_26 = arith.constant 1.000000e+00 : f32
    %40 = vector.broadcast %cst_26 : f32 to vector<8x896xf32>
    %41 = arith.addf %40, %39 : vector<8x896xf32>
    %cst_27 = arith.constant 5.000000e-01 : f32
    %42 = vector.broadcast %cst_27 : f32 to vector<8x896xf32>
    %43 = arith.mulf %42, %41 : vector<8x896xf32>
    %44 = arith.truncf %43 : vector<8x896xf32> to vector<8x896xbf16>
    %c0_28 = arith.constant 0 : index
    %c0_29 = arith.constant 0 : index
    %45 = vector.load %arg11[%c0_28, %c0_29] : memref<8x896xbf16, #tpu.memory_space<vmem>>, vector<8x896xbf16>
    tpu.vector_store %arg11[%c0_28, %c0_29], %44 {strides = array<i32>} : memref<8x896xbf16, #tpu.memory_space<vmem>>, vector<8x896xbf16>,
    %c0_30 = arith.constant 0 : index
    %c0_31 = arith.constant 0 : index
    %46 = vector.load %arg12[%c0_30, %c0_31] : memref<8x128xf32, #tpu.memory_space<vmem>>, vector<8x128xf32>
    tpu.vector_store %arg12[%c0_30, %c0_31], %14 {strides = array<i32>} : memref<8x128xf32, #tpu.memory_space<vmem>>, vector<8x128xf32>,
    %c0_32 = arith.constant 0 : index
    %c0_33 = arith.constant 0 : index
    %47 = vector.load %arg13[%c0_32, %c0_33] : memref<8x128xf32, #tpu.memory_space<vmem>>, vector<8x128xf32>
    tpu.vector_store %arg13[%c0_32, %c0_33], %15 {strides = array<i32>} : memref<8x128xf32, #tpu.memory_space<vmem>>, vector<8x128xf32>,
    return
  }
  func.func @transform_0(%arg0: i32) -> (i32, i32) {
    %c0_i32 = arith.constant 0 : i32
    %c0_i32_0 = arith.constant 0 : i32
    return %arg0, %c0_i32 : i32, i32
  }
  func.func @transform_1(%arg0: i32) -> (i32, i32) {
    %c0_i32 = arith.constant 0 : i32
    %c0_i32_0 = arith.constant 0 : i32
    return %arg0, %c0_i32 : i32, i32
  }
  func.func @transform_2(%arg0: i32) -> (i32, i32) {
    %c0_i32 = arith.constant 0 : i32
    %c0_i32_0 = arith.constant 0 : i32
    %c0_i32_1 = arith.constant 0 : i32
    return %c0_i32, %c0_i32_0 : i32, i32
  }
  func.func @transform_3(%arg0: i32) -> (i32, i32) {
    %c0_i32 = arith.constant 0 : i32
    %c0_i32_0 = arith.constant 0 : i32
    %c0_i32_1 = arith.constant 0 : i32
    return %c0_i32, %c0_i32_0 : i32, i32
  }
  func.func @transform_4(%arg0: i32) -> (i32, i32) {
    %c0_i32 = arith.constant 0 : i32
    %c0_i32_0 = arith.constant 0 : i32
    %c0_i32_1 = arith.constant 0 : i32
    return %c0_i32, %c0_i32_0 : i32, i32
  }
  func.func @transform_5(%arg0: i32) -> (i32, i32) {
    %c0_i32 = arith.constant 0 : i32
    %c0_i32_0 = arith.constant 0 : i32
    %c0_i32_1 = arith.constant 0 : i32
    return %c0_i32, %c0_i32_0 : i32, i32
  }
  func.func @transform_6(%arg0: i32) -> (i32, i32) {
    %c0_i32 = arith.constant 0 : i32
    %c0_i32_0 = arith.constant 0 : i32
    %c0_i32_1 = arith.constant 0 : i32
    return %c0_i32, %c0_i32_0 : i32, i32
  }
  func.func @transform_7(%arg0: i32) -> (i32, i32) {
    %c0_i32 = arith.constant 0 : i32
    %c0_i32_0 = arith.constant 0 : i32
    %c0_i32_1 = arith.constant 0 : i32
    return %c0_i32, %c0_i32_0 : i32, i32
  }
  func.func @transform_8(%arg0: i32) -> (i32, i32) {
    %c0_i32 = arith.constant 0 : i32
    %c0_i32_0 = arith.constant 0 : i32
    %c0_i32_1 = arith.constant 0 : i32
    return %c0_i32, %c0_i32_0 : i32, i32
  }
  func.func @transform_9(%arg0: i32) -> (i32, i32) {
    %c0_i32 = arith.constant 0 : i32
    %c0_i32_0 = arith.constant 0 : i32
    %c0_i32_1 = arith.constant 0 : i32
    return %c0_i32, %c0_i32_0 : i32, i32
  }
  func.func @transform_10(%arg0: i32) -> (i32, i32) {
    %c0_i32 = arith.constant 0 : i32
    %c0_i32_0 = arith.constant 0 : i32
    return %arg0, %c0_i32 : i32, i32
  }
  func.func @transform_11(%arg0: i32) -> (i32, i32) {
    %c0_i32 = arith.constant 0 : i32
    %c0_i32_0 = arith.constant 0 : i32
    return %arg0, %c0_i32 : i32, i32
  }
  func.func @transform_12(%arg0: i32) -> (i32, i32) {
    %c0_i32 = arith.constant 0 : i32
    %c0_i32_0 = arith.constant 0 : i32
    return %arg0, %c0_i32 : i32, i32
  }
}

</mosaic_0001>

<bundles_post_ra>
// kernel: vae_forward.1
= control target key start
LH: loop header
LB: loop body
LE: loop exit
PB: predicated region body
PF: predicated region fallthrough
CT: control target
= control target key end

     0   :  { %18 = vsyncpa [#allocation3], 0  ;;  %vm1267_vm0 = vcmask 130048   ;;  %s7222_s0 = inlined_call_operand.vmem [shape: bf16[8,784], index: 0, kind: input, shape index: {}]   ;;  %s7223_s1 = inlined_call_operand.vmem [shape: f32[8,128], index: 1, kind: input, shape index: {}]   ;;  %s7224_s2 = inlined_call_operand.vmem [shape: bf16[784,512], index: 2, kind: input, shape index: {}]   ;;  %s7225_s3 = inlined_call_operand.vmem [shape: f32[1,512], index: 3, kind: input, shape index: {}]   ;;  %s7226_s4 = inlined_call_operand.vmem [shape: bf16[512,256], index: 4, kind: input, shape index: {}]   ;;  %s7227_s5 = inlined_call_operand.vmem [shape: f32[1,256], index: 5, kind: input, shape index: {}]   ;;  %s7228_s6 = inlined_call_operand.vmem [shape: bf16[32,512], index: 6, kind: input, shape index: {}]   ;;  %s7229_s7 = inlined_call_operand.vmem [shape: f32[1,512], index: 7, kind: input, shape index: {}]   ;;  %s7230_s8 = inlined_call_operand.vmem [shape: bf16[512,896], index: 8, kind: input, shape index: {}]   ;;  %s7231_s9 = inlined_call_operand.vmem [shape: f32[1,896], index: 9, kind: input, shape index: {}]   ;;  %s7232_s10 = inlined_call_operand.vmem [shape: bf16[8,896], index: 10, kind: output, shape index: {0}]   ;;  %s7233_s11 = inlined_call_operand.hbm [shape: f32[8,128], index: 11, kind: output, shape index: {1}]   ;;  %s7234_s12 = inlined_call_operand.hbm [shape: f32[8,128], index: 12, kind: output, shape index: {2}]  }
   0x1   :  { %v4730_v0 = vld [vmem:[%s7224_s2 + $0x4] ss:$16 sps:$4 sm:$0xff]   ;;  %v4732_v1 = vld [vmem:[%s7224_s2 + $0xc] ss:$16 sps:$4 sm:$0xff]   ;;  %v4734_v2 = vld [vmem:[%s7224_s2] ss:$16 sps:$4 sm:$0xff]  }
   0x2   :  { %1271 = vmatprep.subr.bf16.mxu0 %v4730_v0  ;;  %v4735_v3 = vld [vmem:[%s7224_s2 + $0x8] ss:$16 sps:$4 sm:$0xff]   ;;  %1435 = vmatprep.subr.bf16.mxu1 %v4732_v1  ;;  %v4736_v4 = vld [vmem:[%s7224_s2 + $0x24] ss:$16 sps:$4 sm:$0xff]   ;;  %v4738_v5 = vld [vmem:[%s7224_s2 + $0x2c] ss:$16 sps:$4 sm:$0xff]  }
   0x3   :  { %1272 = vmatpush1.bf16.msra.mxu0 %v4734_v2  ;;  %1436 = vmatpush1.bf16.msra.mxu1 %v4735_v3  ;;  %v4740_v6 = vld [vmem:[%s7224_s2 + $0x20] ss:$16 sps:$4 sm:$0xff]   ;;  %v4741_v7 = vld [vmem:[%s7224_s2 + $0x28] ss:$16 sps:$4 sm:$0xff]   ;;  %v4742_v8 = vld [vmem:[%s7224_s2 + $0x44] ss:$16 sps:$4 sm:$0xff]  }
   0x4   :  { %1273 = vmatprep.subr.bf16.mxu0 %v4736_v4  ;;  %1437 = vmatprep.subr.bf16.mxu1 %v4738_v5  ;;  %v4744_v9 = vld [vmem:[%s7224_s2 + $0x4c] ss:$16 sps:$4 sm:$0xff]   ;;  %v4746_v10 = vld [vmem:[%s7224_s2 + $0x40] ss:$16 sps:$4 sm:$0xff]   ;;  %v4747_v11 = vld [vmem:[%s7224_s2 + $0x48] ss:$16 sps:$4 sm:$0xff]  }
   0x5   :  { %v4748_v12 = vld [vmem:[%s7224_s2 + $0x64] ss:$16 sps:$4 sm:$0xff]   ;;  %v4750_v13 = vld [vmem:[%s7224_s2 + $0x6c] ss:$16 sps:$4 sm:$0xff]   ;;  %v4752_v14 = vld [vmem:[%s7224_s2 + $0x60] ss:$16 sps:$4 sm:$0xff]  }
   0x6   :  { %v4753_v15 = vld [vmem:[%s7224_s2 + $0x68] ss:$16 sps:$4 sm:$0xff]   ;;  %v4754_v16 = vld [vmem:[%s7224_s2 + $0x84] ss:$16 sps:$4 sm:$0xff]   ;;  %v4756_v17 = vld [vmem:[%s7224_s2 + $0x8c] ss:$16 sps:$4 sm:$0xff]  }
   0x7   :  { %1274 = vmatpush1.bf16.msra.mxu0 %v4740_v6  ;;  %1438 = vmatpush1.bf16.msra.mxu1 %v4741_v7  ;;  %v4758_v18 = vld [vmem:[%s7224_s2 + $0x80] ss:$16 sps:$4 sm:$0xff]   ;;  %v4759_v19 = vld [vmem:[%s7224_s2 + $0x88] ss:$16 sps:$4 sm:$0xff]   ;;  %v4760_v20 = vld [vmem:[%s7224_s2 + $0xa4] ss:$16 sps:$4 sm:$0xff]  }
   0x8   :  { %1275 = vmatprep.subr.bf16.mxu0 %v4742_v8  ;;  %1439 = vmatprep.subr.bf16.mxu1 %v4744_v9  ;;  %v4762_v21 = vld [vmem:[%s7224_s2 + $0xac] ss:$16 sps:$4 sm:$0xff]   ;;  %v4764_v22 = vld [vmem:[%s7224_s2 + $0xa0] ss:$16 sps:$4 sm:$0xff]   ;;  %v4765_v23 = vld [vmem:[%s7224_s2 + $0xa8] ss:$16 sps:$4 sm:$0xff]  }
   0x9   :  { %v4766_v24 = vld [vmem:[%s7224_s2 + $0xc4] ss:$16 sps:$4 sm:$0xff]   ;;  %v4768_v25 = vld [vmem:[%s7224_s2 + $0xcc] ss:$16 sps:$4 sm:$0xff]   ;;  %v4770_v26 = vld [vmem:[%s7224_s2 + $0xc0] ss:$16 sps:$4 sm:$0xff]  }
   0xa   :  { %v4771_v27 = vld [vmem:[%s7224_s2 + $0xc8] ss:$16 sps:$4 sm:$0xff]   ;;  %v4772_v28 = vld [vmem:[%s7224_s2 + $0xe4] ss:$16 sps:$4 sm:$0xff]   ;;  %v4774_v29 = vld [vmem:[%s7224_s2 + $0xec] ss:$16 sps:$4 sm:$0xff]  }
   0xb   :  { %1276 = vmatpush1.bf16.msra.mxu0 %v4746_v10  ;;  %1440 = vmatpush1.bf16.msra.mxu1 %v4747_v11  ;;  %v4776_v30 = vld [vmem:[%s7224_s2 + $0xe0] ss:$16 sps:$4 sm:$0xff]   ;;  %v4777_v31 = vld [vmem:[%s7224_s2 + $0xe8] ss:$16 sps:$4 sm:$0xff]   ;;  %v4778_v32 = vld [vmem:[%s7224_s2 + $0x104] ss:$16 sps:$4 sm:$0xff]  }
   0xc   :  { %1277 = vmatprep.subr.bf16.mxu0 %v4748_v12  ;;  %1441 = vmatprep.subr.bf16.mxu1 %v4750_v13  ;;  %v4780_v33 = vld [vmem:[%s7224_s2 + $0x10c] ss:$16 sps:$4 sm:$0xff]   ;;  %v4782_v34 = vld [vmem:[%s7224_s2 + $0x100] ss:$16 sps:$4 sm:$0xff]   ;;  %v4783_v35 = vld [vmem:[%s7224_s2 + $0x108] ss:$16 sps:$4 sm:$0xff]  }
   0xd   :  { %v4784_v36 = vld [vmem:[%s7224_s2 + $0x124] ss:$16 sps:$4 sm:$0xff]   ;;  %v4786_v37 = vld [vmem:[%s7224_s2 + $0x12c] ss:$16 sps:$4 sm:$0xff]   ;;  %v4788_v38 = vld [vmem:[%s7224_s2 + $0x120] ss:$16 sps:$4 sm:$0xff]  }
   0xe   :  { %v4789_v39 = vld [vmem:[%s7224_s2 + $0x128] ss:$16 sps:$4 sm:$0xff]   ;;  %v4790_v40 = vld [vmem:[%s7224_s2 + $0x144] ss:$16 sps:$4 sm:$0xff]   ;;  %v4792_v41 = vld [vmem:[%s7224_s2 + $0x14c] ss:$16 sps:$4 sm:$0xff]  }
   0xf   :  { %1278 = vmatpush1.bf16.msra.mxu0 %v4752_v14  ;;  %1442 = vmatpush1.bf16.msra.mxu1 %v4753_v15  ;;  %v4794_v42 = vld [vmem:[%s7224_s2 + $0x140] ss:$16 sps:$4 sm:$0xff]   ;;  %v4795_v43 = vld [vmem:[%s7224_s2 + $0x148] ss:$16 sps:$4 sm:$0xff]   ;;  %v4796_v44 = vld [vmem:[%s7224_s2 + $0x164] ss:$16 sps:$4 sm:$0xff]  }
  0x10   :  { %1279 = vmatprep.subr.bf16.mxu0 %v4754_v16  ;;  %1443 = vmatprep.subr.bf16.mxu1 %v4756_v17  ;;  %v4798_v45 = vld [vmem:[%s7224_s2 + $0x16c] ss:$16 sps:$4 sm:$0xff]   ;;  %v41_v46 = vld [vmem:[%s7222_s0] sm:$0xff]  ;;  %v4801_v49 = vld [vmem:[%s7224_s2 + $0x168] ss:$16 sps:$4 sm:$0xff]  }
  0x11   :  { %v4800_v47 = vld [vmem:[%s7224_s2 + $0x160] ss:$16 sps:$4 sm:$0xff]   ;;  %v4123_v48 = vcombine.high %v41_v46, %v41_v46  ;;  %v4802_v50 = vld [vmem:[%s7224_s2 + $0x184] ss:$16 sps:$4 sm:$0xff]   ;;  %v4804_v51 = vld [vmem:[%s7224_s2 + $0x18c] ss:$16 sps:$4 sm:$0xff]   ;;  %v4122_v4 = vcombine.low %v41_v46, %v41_v46 }
  0x12   :  { %v4806_v52 = vld [vmem:[%s7224_s2 + $0x180] ss:$16 sps:$4 sm:$0xff]   ;;  %v4807_v53 = vld [vmem:[%s7224_s2 + $0x188] ss:$16 sps:$4 sm:$0xff]   ;;  %v4808_v54 = vld [vmem:[%s7224_s2 + $0x1a4] ss:$16 sps:$4 sm:$0xff]  }
  0x13   :  { %1280 = vmatpush1.bf16.msra.mxu0 %v4758_v18  ;;  %1444 = vmatpush1.bf16.msra.mxu1 %v4759_v19  ;;  %v4810_v55 = vld [vmem:[%s7224_s2 + $0x1ac] ss:$16 sps:$4 sm:$0xff]   ;;  %v4812_v56 = vld [vmem:[%s7224_s2 + $0x1a0] ss:$16 sps:$4 sm:$0xff]   ;;  %v4813_v57 = vld [vmem:[%s7224_s2 + $0x1a8] ss:$16 sps:$4 sm:$0xff]  }
  0x14   :  { %1281 = vmatprep.subr.bf16.mxu0 %v4760_v20  ;;  %1445 = vmatprep.subr.bf16.mxu1 %v4762_v21  ;;  %v4814_v58 = vld [vmem:[%s7224_s2 + $0x1c4] ss:$16 sps:$4 sm:$0xff]   ;;  %v4816_v59 = vld [vmem:[%s7224_s2 + $0x1cc] ss:$16 sps:$4 sm:$0xff]   ;;  %v4818_v60 = vld [vmem:[%s7224_s2 + $0x1c0] ss:$16 sps:$4 sm:$0xff]  }
  0x15   :  { %1303 = vmatprep.mubr.bf16.mxu0 %v4123_v48  ;;  %1467 = vmatprep.mubr.bf16.mxu1 %v4123_v48  ;;  %v4819_v61 = vld [vmem:[%s7224_s2 + $0x1c8] ss:$16 sps:$4 sm:$0xff]   ;;  %v4820_v62 = vld [vmem:[%s7224_s2 + $0x1e4] ss:$16 sps:$4 sm:$0xff]   ;;  %v4822_v63 = vld [vmem:[%s7224_s2 + $0x1ec] ss:$16 sps:$4 sm:$0xff]  }
  0x16   :  { %v4824_v0 = vld [vmem:[%s7224_s2 + $0x1e0] ss:$16 sps:$4 sm:$0xff]   ;;  %v4825_v1 = vld [vmem:[%s7224_s2 + $0x1e8] ss:$16 sps:$4 sm:$0xff]   ;;  %v4830_v2 = vld [vmem:[%s7224_s2 + $0x204] ss:$16 sps:$4 sm:$0xff]  }
  0x17   :  { %1282 = vmatpush1.bf16.msra.mxu0 %v4764_v22  ;;  %1446 = vmatpush1.bf16.msra.mxu1 %v4765_v23  ;;  %v4833_v3 = vld [vmem:[%s7224_s2 + $0x20c] ss:$16 sps:$4 sm:$0xff]   ;;  %v4828_v5 = vld [vmem:[%s7224_s2 + $0x200] ss:$16 sps:$4 sm:$0xff]   ;;  %v4831_v6 = vld [vmem:[%s7224_s2 + $0x208] ss:$16 sps:$4 sm:$0xff]  }
  0x18   :  { %1283 = vmatprep.subr.bf16.mxu0 %v4766_v24  ;;  %1447 = vmatprep.subr.bf16.mxu1 %v4768_v25  ;;  %v4836_v7 = vld [vmem:[%s7224_s2 + $0x224] ss:$16 sps:$4 sm:$0xff]   ;;  %v4839_v8 = vld [vmem:[%s7224_s2 + $0x22c] ss:$16 sps:$4 sm:$0xff]   ;;  %v4834_v9 = vld [vmem:[%s7224_s2 + $0x220] ss:$16 sps:$4 sm:$0xff]  }
  0x19   :  { %v4837_v10 = vld [vmem:[%s7224_s2 + $0x228] ss:$16 sps:$4 sm:$0xff]   ;;  %v4842_v11 = vld [vmem:[%s7224_s2 + $0x244] ss:$16 sps:$4 sm:$0xff]   ;;  %v4845_v12 = vld [vmem:[%s7224_s2 + $0x24c] ss:$16 sps:$4 sm:$0xff]  }
  0x1a   :  { %v4840_v13 = vld [vmem:[%s7224_s2 + $0x240] ss:$16 sps:$4 sm:$0xff]   ;;  %v4843_v14 = vld [vmem:[%s7224_s2 + $0x248] ss:$16 sps:$4 sm:$0xff]   ;;  %v4848_v15 = vld [vmem:[%s7224_s2 + $0x264] ss:$16 sps:$4 sm:$0xff]  }
  0x1b   :  { %1284 = vmatpush1.bf16.msra.mxu0 %v4770_v26  ;;  %1448 = vmatpush1.bf16.msra.mxu1 %v4771_v27  ;;  %v4851_v16 = vld [vmem:[%s7224_s2 + $0x26c] ss:$16 sps:$4 sm:$0xff]   ;;  %v4846_v17 = vld [vmem:[%s7224_s2 + $0x260] ss:$16 sps:$4 sm:$0xff]   ;;  %v4849_v18 = vld [vmem:[%s7224_s2 + $0x268] ss:$16 sps:$4 sm:$0xff]  }
  0x1c   :  { %1285 = vmatprep.subr.bf16.mxu0 %v4772_v28  ;;  %1449 = vmatprep.subr.bf16.mxu1 %v4774_v29  ;;  %v4854_v19 = vld [vmem:[%s7224_s2 + $0x284] ss:$16 sps:$4 sm:$0xff]   ;;  %v4857_v20 = vld [vmem:[%s7224_s2 + $0x28c] ss:$16 sps:$4 sm:$0xff]   ;;  %v4852_v21 = vld [vmem:[%s7224_s2 + $0x280] ss:$16 sps:$4 sm:$0xff]  }
  0x1d   :  { %v4855_v22 = vld [vmem:[%s7224_s2 + $0x288] ss:$16 sps:$4 sm:$0xff]   ;;  %v4860_v23 = vld [vmem:[%s7224_s2 + $0x2a4] ss:$16 sps:$4 sm:$0xff]   ;;  %v4863_v24 = vld [vmem:[%s7224_s2 + $0x2ac] ss:$16 sps:$4 sm:$0xff]  }
  0x1e   :  { %v4858_v25 = vld [vmem:[%s7224_s2 + $0x2a0] ss:$16 sps:$4 sm:$0xff]   ;;  %v4861_v26 = vld [vmem:[%s7224_s2 + $0x2a8] ss:$16 sps:$4 sm:$0xff]   ;;  %v4866_v27 = vld [vmem:[%s7224_s2 + $0x2c4] ss:$16 sps:$4 sm:$0xff]  }
  0x1f   :  { %1286 = vmatpush1.bf16.msra.mxu0 %v4776_v30  ;;  %1450 = vmatpush1.bf16.msra.mxu1 %v4777_v31  ;;  %v4869_v28 = vld [vmem:[%s7224_s2 + $0x2cc] ss:$16 sps:$4 sm:$0xff]   ;;  %v4864_v31 = vld [vmem:[%s7224_s2 + $0x2c0] ss:$16 sps:$4 sm:$0xff]   ;;  %v4891_v48 = vld [vmem:[%s7224_s2 + $0x348] ss:$16 sps:$4 sm:$0xff]  }
  0x20   :  { %1287 = vmatprep.subr.bf16.mxu0 %v4778_v32  ;;  %1451 = vmatprep.subr.bf16.mxu1 %v4780_v33  ;;  %v5867_v29 = vld [vmem:[%s7222_s0 + $0x8] sm:$0xff]  ;;  %v4872_v33 = vld [vmem:[%s7224_s2 + $0x2e4] ss:$16 sps:$4 sm:$0xff]  }
  0x21   :  { %v4125_v30 = vcombine.high %v5867_v29, %v5867_v29  ;;  %v4867_v32 = vld [vmem:[%s7224_s2 + $0x2c8] ss:$16 sps:$4 sm:$0xff]   ;;  %v4893_v46 = vld [vmem:[%s7224_s2 + $0x34c] ss:$16 sps:$4 sm:$0xff]  }
  0x23   :  { %1288 = vmatpush1.bf16.msra.mxu0 %v4782_v34  ;;  %1452 = vmatpush1.bf16.msra.mxu1 %v4783_v35  ;;  %v4875_v34 = vld [vmem:[%s7224_s2 + $0x2ec] ss:$16 sps:$4 sm:$0xff]   ;;  %v4870_v35 = vld [vmem:[%s7224_s2 + $0x2e0] ss:$16 sps:$4 sm:$0xff]  }
  0x24   :  { %1289 = vmatprep.subr.bf16.mxu0 %v4784_v36  ;;  %1453 = vmatprep.subr.bf16.mxu1 %v4786_v37  ;;  %v4873_v36 = vld [vmem:[%s7224_s2 + $0x2e8] ss:$16 sps:$4 sm:$0xff]   ;;  %v4878_v37 = vld [vmem:[%s7224_s2 + $0x304] ss:$16 sps:$4 sm:$0xff]  }
  0x27   :  { %1290 = vmatpush1.bf16.msra.mxu0 %v4788_v38  ;;  %1454 = vmatpush1.bf16.msra.mxu1 %v4789_v39  ;;  %v4881_v38 = vld [vmem:[%s7224_s2 + $0x30c] ss:$16 sps:$4 sm:$0xff]   ;;  %v4876_v39 = vld [vmem:[%s7224_s2 + $0x300] ss:$16 sps:$4 sm:$0xff]  }
  0x28   :  { %1291 = vmatprep.subr.bf16.mxu0 %v4790_v40  ;;  %1455 = vmatprep.subr.bf16.mxu1 %v4792_v41  ;;  %v4879_v40 = vld [vmem:[%s7224_s2 + $0x308] ss:$16 sps:$4 sm:$0xff]   ;;  %v4884_v41 = vld [vmem:[%s7224_s2 + $0x324] ss:$16 sps:$4 sm:$0xff]  }
  0x2b   :  { %1292 = vmatpush1.bf16.msra.mxu0 %v4794_v42  ;;  %1456 = vmatpush1.bf16.msra.mxu1 %v4795_v43  ;;  %v4887_v42 = vld [vmem:[%s7224_s2 + $0x32c] ss:$16 sps:$4 sm:$0xff]   ;;  %v4882_v43 = vld [vmem:[%s7224_s2 + $0x320] ss:$16 sps:$4 sm:$0xff]  }
  0x2c   :  { %1293 = vmatprep.subr.bf16.mxu0 %v4796_v44  ;;  %1457 = vmatprep.subr.bf16.mxu1 %v4798_v45  ;;  %v4885_v44 = vld [vmem:[%s7224_s2 + $0x328] ss:$16 sps:$4 sm:$0xff]   ;;  %v4890_v45 = vld [vmem:[%s7224_s2 + $0x344] ss:$16 sps:$4 sm:$0xff]  }
  0x2f   :  { %1294 = vmatpush1.bf16.msra.mxu0 %v4800_v47  ;;  %1458 = vmatpush1.bf16.msra.mxu1 %v4801_v49  ;;  %v4888_v47 = vld [vmem:[%s7224_s2 + $0x340] ss:$16 sps:$4 sm:$0xff]   ;;  %v4896_v49 = vld [vmem:[%s7224_s2 + $0x364] ss:$16 sps:$4 sm:$0xff]  }
  0x30   :  { %1295 = vmatprep.subr.bf16.mxu0 %v4802_v50  ;;  %1459 = vmatprep.subr.bf16.mxu1 %v4804_v51  ;;  %v4899_v50 = vld [vmem:[%s7224_s2 + $0x36c] ss:$16 sps:$4 sm:$0xff]   ;;  %v4894_v51 = vld [vmem:[%s7224_s2 + $0x360] ss:$16 sps:$4 sm:$0xff]  }
  0x33   :  { %1296 = vmatpush1.bf16.msra.mxu0 %v4806_v52  ;;  %1460 = vmatpush1.bf16.msra.mxu1 %v4807_v53  ;;  %v4897_v52 = vld [vmem:[%s7224_s2 + $0x368] ss:$16 sps:$4 sm:$0xff]   ;;  %v4902_v53 = vld [vmem:[%s7224_s2 + $0x384] ss:$16 sps:$4 sm:$0xff]  }
  0x34   :  { %1297 = vmatprep.subr.bf16.mxu0 %v4808_v54  ;;  %1461 = vmatprep.subr.bf16.mxu1 %v4810_v55  ;;  %v4905_v54 = vld [vmem:[%s7224_s2 + $0x38c] ss:$16 sps:$4 sm:$0xff]   ;;  %v4900_v55 = vld [vmem:[%s7224_s2 + $0x380] ss:$16 sps:$4 sm:$0xff]  }
  0x37   :  { %1298 = vmatpush1.bf16.msra.mxu0 %v4812_v56  ;;  %1462 = vmatpush1.bf16.msra.mxu1 %v4813_v57  ;;  %v4903_v56 = vld [vmem:[%s7224_s2 + $0x388] ss:$16 sps:$4 sm:$0xff]   ;;  %v4908_v57 = vld [vmem:[%s7224_s2 + $0x3a4] ss:$16 sps:$4 sm:$0xff]  }
  0x38   :  { %1299 = vmatprep.subr.bf16.mxu0 %v4814_v58  ;;  %1463 = vmatprep.subr.bf16.mxu1 %v4816_v59  ;;  %v4911_v58 = vld [vmem:[%s7224_s2 + $0x3ac] ss:$16 sps:$4 sm:$0xff]   ;;  %v4906_v59 = vld [vmem:[%s7224_s2 + $0x3a0] ss:$16 sps:$4 sm:$0xff]  }
  0x3b   :  { %1300 = vmatpush1.bf16.msra.mxu0 %v4818_v60  ;;  %1464 = vmatpush1.bf16.msra.mxu1 %v4819_v61  ;;  %v4909_v60 = vld [vmem:[%s7224_s2 + $0x3a8] ss:$16 sps:$4 sm:$0xff]   ;;  %v4914_v61 = vld [vmem:[%s7224_s2 + $0x3c4] ss:$16 sps:$4 sm:$0xff]  }
  0x3c   :  { %1301 = vmatprep.subr.bf16.mxu0 %v4820_v62  ;;  %1465 = vmatprep.subr.bf16.mxu1 %v4822_v63  ;;  %v4917_v62 = vld [vmem:[%s7224_s2 + $0x3cc] ss:$16 sps:$4 sm:$0xff]   ;;  %v4912_v63 = vld [vmem:[%s7224_s2 + $0x3c0] ss:$16 sps:$4 sm:$0xff]  }
  0x3f   :  { %1302 = vmatpush1.bf16.msra.mxu0 %v4824_v0  ;;  %1466 = vmatpush1.bf16.msra.mxu1 %v4825_v1  ;;  %v4915_v0 = vld [vmem:[%s7224_s2 + $0x3c8] ss:$16 sps:$4 sm:$0xff]   ;;  %v4920_v1 = vld [vmem:[%s7224_s2 + $0x3e4] ss:$16 sps:$4 sm:$0xff]  }
  0x40   :  { %1312 = vmatprep.subr.bf16.mxu0 %v4830_v2  ;;  %1476 = vmatprep.subr.bf16.mxu1 %v4833_v3  ;;  %v4923_v2 = vld [vmem:[%s7224_s2 + $0x3ec] ss:$16 sps:$4 sm:$0xff]   ;;  %v4918_v3 = vld [vmem:[%s7224_s2 + $0x3e0] ss:$16 sps:$4 sm:$0xff]  }
  0x42   :  { %1304 = vmatmul.mubr.bf16.vlgmr.msra.gmra.mrb[0].mxu0 %v4122_v4  ;;  %1468 = vmatmul.mubr.bf16.vlgmr.msra.gmra.mrb[0].mxu1 %v4122_v4  ;;  %v4921_v4 = vld [vmem:[%s7224_s2 + $0x3e8] ss:$16 sps:$4 sm:$0xff]  }
  0x43   :  { %1313 = vmatpush1.bf16.msra.mxu0 %v4828_v5  ;;  %1477 = vmatpush1.bf16.msra.mxu1 %v4831_v6  ;;  %v4928_v5 = vld [vmem:[%s7224_s2 + $0x404] ss:$16 sps:$4 sm:$0xff]   ;;  %v4931_v6 = vld [vmem:[%s7224_s2 + $0x40c] ss:$16 sps:$4 sm:$0xff]  }
  0x44   :  { %1314 = vmatprep.subr.bf16.mxu0 %v4836_v7  ;;  %1478 = vmatprep.subr.bf16.mxu1 %v4839_v8  ;;  %v4124_v7 = vcombine.low %v5867_v29, %v5867_v29  ;;  %v4926_v8 = vld [vmem:[%s7224_s2 + $0x400] ss:$16 sps:$4 sm:$0xff]   ;;  %v4961_v29 = vld [vmem:[%s7224_s2 + $0x4ac] ss:$16 sps:$4 sm:$0xff]  }
  0x45   :  { %1344 = vmatprep.mubr.bf16.mxu0 %v4125_v30  ;;  %1508 = vmatprep.mubr.bf16.mxu1 %v4125_v30  ;;  %v4956_v30 = vld [vmem:[%s7224_s2 + $0x4a0] ss:$16 sps:$4 sm:$0xff]  }
  0x47   :  { %1315 = vmatpush1.bf16.msra.mxu0 %v4834_v9  ;;  %1479 = vmatpush1.bf16.msra.mxu1 %v4837_v10  ;;  %v4929_v9 = vld [vmem:[%s7224_s2 + $0x408] ss:$16 sps:$4 sm:$0xff]   ;;  %v4934_v10 = vld [vmem:[%s7224_s2 + $0x424] ss:$16 sps:$4 sm:$0xff]  }
  0x48   :  { %1316 = vmatprep.subr.bf16.mxu0 %v4842_v11  ;;  %1480 = vmatprep.subr.bf16.mxu1 %v4845_v12  ;;  %v6005_v11 = vld [vmem:[%s7222_s0 + $0x10] sm:$0xff]  ;;  %v4937_v12 = vld [vmem:[%s7224_s2 + $0x42c] ss:$16 sps:$4 sm:$0xff]  }
  0x4b   :  { %1317 = vmatpush1.bf16.msra.mxu0 %v4840_v13  ;;  %1481 = vmatpush1.bf16.msra.mxu1 %v4843_v14  ;;  %v4127_v13 = vcombine.high %v6005_v11, %v6005_v11  ;;  %v4932_v14 = vld [vmem:[%s7224_s2 + $0x420] ss:$16 sps:$4 sm:$0xff]  }
  0x4c   :  { %1318 = vmatprep.subr.bf16.mxu0 %v4848_v15  ;;  %1482 = vmatprep.subr.bf16.mxu1 %v4851_v16  ;;  %v4935_v15 = vld [vmem:[%s7224_s2 + $0x428] ss:$16 sps:$4 sm:$0xff]   ;;  %v4940_v16 = vld [vmem:[%s7224_s2 + $0x444] ss:$16 sps:$4 sm:$0xff]  }
  0x4f   :  { %1319 = vmatpush1.bf16.msra.mxu0 %v4846_v17  ;;  %1483 = vmatpush1.bf16.msra.mxu1 %v4849_v18  ;;  %v4943_v17 = vld [vmem:[%s7224_s2 + $0x44c] ss:$16 sps:$4 sm:$0xff]   ;;  %v4938_v18 = vld [vmem:[%s7224_s2 + $0x440] ss:$16 sps:$4 sm:$0xff]  }
  0x50   :  { %1320 = vmatprep.subr.bf16.mxu0 %v4854_v19  ;;  %1484 = vmatprep.subr.bf16.mxu1 %v4857_v20  ;;  %v4941_v19 = vld [vmem:[%s7224_s2 + $0x448] ss:$16 sps:$4 sm:$0xff]   ;;  %v4946_v20 = vld [vmem:[%s7224_s2 + $0x464] ss:$16 sps:$4 sm:$0xff]  }
  0x53   :  { %1321 = vmatpush1.bf16.msra.mxu0 %v4852_v21  ;;  %1485 = vmatpush1.bf16.msra.mxu1 %v4855_v22  ;;  %v4949_v21 = vld [vmem:[%s7224_s2 + $0x46c] ss:$16 sps:$4 sm:$0xff]   ;;  %v4944_v22 = vld [vmem:[%s7224_s2 + $0x460] ss:$16 sps:$4 sm:$0xff]  }
  0x54   :  { %1322 = vmatprep.subr.bf16.mxu0 %v4860_v23  ;;  %1486 = vmatprep.subr.bf16.mxu1 %v4863_v24  ;;  %v4947_v23 = vld [vmem:[%s7224_s2 + $0x468] ss:$16 sps:$4 sm:$0xff]   ;;  %v4952_v24 = vld [vmem:[%s7224_s2 + $0x484] ss:$16 sps:$4 sm:$0xff]  }
  0x57   :  { %1323 = vmatpush1.bf16.msra.mxu0 %v4858_v25  ;;  %1487 = vmatpush1.bf16.msra.mxu1 %v4861_v26  ;;  %v4955_v25 = vld [vmem:[%s7224_s2 + $0x48c] ss:$16 sps:$4 sm:$0xff]   ;;  %v4950_v26 = vld [vmem:[%s7224_s2 + $0x480] ss:$16 sps:$4 sm:$0xff]  }
  0x58   :  { %1324 = vmatprep.subr.bf16.mxu0 %v4866_v27  ;;  %1488 = vmatprep.subr.bf16.mxu1 %v4869_v28  ;;  %v4953_v27 = vld [vmem:[%s7224_s2 + $0x488] ss:$16 sps:$4 sm:$0xff]   ;;  %v4958_v28 = vld [vmem:[%s7224_s2 + $0x4a4] ss:$16 sps:$4 sm:$0xff]  }
  0x5b   :  { %1325 = vmatpush1.bf16.msra.mxu0 %v4864_v31  ;;  %1489 = vmatpush1.bf16.msra.mxu1 %v4867_v32  ;;  %v4959_v31 = vld [vmem:[%s7224_s2 + $0x4a8] ss:$16 sps:$4 sm:$0xff]   ;;  %v4964_v32 = vld [vmem:[%s7224_s2 + $0x4c4] ss:$16 sps:$4 sm:$0xff]  }
  0x5c   :  { %1326 = vmatprep.subr.bf16.mxu0 %v4872_v33  ;;  %1490 = vmatprep.subr.bf16.mxu1 %v4875_v34  ;;  %v4967_v33 = vld [vmem:[%s7224_s2 + $0x4cc] ss:$16 sps:$4 sm:$0xff]   ;;  %v4962_v34 = vld [vmem:[%s7224_s2 + $0x4c0] ss:$16 sps:$4 sm:$0xff]  }
  0x5f   :  { %1327 = vmatpush1.bf16.msra.mxu0 %v4870_v35  ;;  %1491 = vmatpush1.bf16.msra.mxu1 %v4873_v36  ;;  %v4965_v35 = vld [vmem:[%s7224_s2 + $0x4c8] ss:$16 sps:$4 sm:$0xff]   ;;  %v4970_v36 = vld [vmem:[%s7224_s2 + $0x4e4] ss:$16 sps:$4 sm:$0xff]  }
  0x60   :  { %1328 = vmatprep.subr.bf16.mxu0 %v4878_v37  ;;  %1492 = vmatprep.subr.bf16.mxu1 %v4881_v38  ;;  %v4973_v37 = vld [vmem:[%s7224_s2 + $0x4ec] ss:$16 sps:$4 sm:$0xff]   ;;  %v4968_v38 = vld [vmem:[%s7224_s2 + $0x4e0] ss:$16 sps:$4 sm:$0xff]  }
  0x63   :  { %1329 = vmatpush1.bf16.msra.mxu0 %v4876_v39  ;;  %1493 = vmatpush1.bf16.msra.mxu1 %v4879_v40  ;;  %v4971_v39 = vld [vmem:[%s7224_s2 + $0x4e8] ss:$16 sps:$4 sm:$0xff]   ;;  %v4976_v40 = vld [vmem:[%s7224_s2 + $0x504] ss:$16 sps:$4 sm:$0xff]  }
  0x64   :  { %1330 = vmatprep.subr.bf16.mxu0 %v4884_v41  ;;  %1494 = vmatprep.subr.bf16.mxu1 %v4887_v42  ;;  %v4979_v41 = vld [vmem:[%s7224_s2 + $0x50c] ss:$16 sps:$4 sm:$0xff]   ;;  %v4974_v42 = vld [vmem:[%s7224_s2 + $0x500] ss:$16 sps:$4 sm:$0xff]  }
  0x67   :  { %1331 = vmatpush1.bf16.msra.mxu0 %v4882_v43  ;;  %1495 = vmatpush1.bf16.msra.mxu1 %v4885_v44  ;;  %v4977_v43 = vld [vmem:[%s7224_s2 + $0x508] ss:$16 sps:$4 sm:$0xff]   ;;  %v4982_v44 = vld [vmem:[%s7224_s2 + $0x524] ss:$16 sps:$4 sm:$0xff]  }
  0x68   :  { %1332 = vmatprep.subr.bf16.mxu0 %v4890_v45  ;;  %1496 = vmatprep.subr.bf16.mxu1 %v4893_v46  ;;  %v4985_v45 = vld [vmem:[%s7224_s2 + $0x52c] ss:$16 sps:$4 sm:$0xff]   ;;  %v4980_v46 = vld [vmem:[%s7224_s2 + $0x520] ss:$16 sps:$4 sm:$0xff]  }
  0x6b   :  { %1333 = vmatpush1.bf16.msra.mxu0 %v4888_v47  ;;  %1497 = vmatpush1.bf16.msra.mxu1 %v4891_v48  ;;  %v4983_v47 = vld [vmem:[%s7224_s2 + $0x528] ss:$16 sps:$4 sm:$0xff]   ;;  %v4988_v48 = vld [vmem:[%s7224_s2 + $0x544] ss:$16 sps:$4 sm:$0xff]  }
  0x6c   :  { %1334 = vmatprep.subr.bf16.mxu0 %v4896_v49  ;;  %1498 = vmatprep.subr.bf16.mxu1 %v4899_v50  ;;  %v4991_v49 = vld [vmem:[%s7224_s2 + $0x54c] ss:$16 sps:$4 sm:$0xff]   ;;  %v4986_v50 = vld [vmem:[%s7224_s2 + $0x540] ss:$16 sps:$4 sm:$0xff]  }
  0x6f   :  { %1335 = vmatpush1.bf16.msra.mxu0 %v4894_v51  ;;  %1499 = vmatpush1.bf16.msra.mxu1 %v4897_v52  ;;  %v4989_v51 = vld [vmem:[%s7224_s2 + $0x548] ss:$16 sps:$4 sm:$0xff]   ;;  %v4994_v52 = vld [vmem:[%s7224_s2 + $0x564] ss:$16 sps:$4 sm:$0xff]  }
  0x70   :  { %1336 = vmatprep.subr.bf16.mxu0 %v4902_v53  ;;  %1500 = vmatprep.subr.bf16.mxu1 %v4905_v54  ;;  %v4997_v53 = vld [vmem:[%s7224_s2 + $0x56c] ss:$16 sps:$4 sm:$0xff]   ;;  %v4992_v54 = vld [vmem:[%s7224_s2 + $0x560] ss:$16 sps:$4 sm:$0xff]  }
  0x73   :  { %1337 = vmatpush1.bf16.msra.mxu0 %v4900_v55  ;;  %1501 = vmatpush1.bf16.msra.mxu1 %v4903_v56  ;;  %v4995_v55 = vld [vmem:[%s7224_s2 + $0x568] ss:$16 sps:$4 sm:$0xff]   ;;  %v5000_v56 = vld [vmem:[%s7224_s2 + $0x584] ss:$16 sps:$4 sm:$0xff]  }
  0x74   :  { %1338 = vmatprep.subr.bf16.mxu0 %v4908_v57  ;;  %1502 = vmatprep.subr.bf16.mxu1 %v4911_v58  ;;  %v5003_v57 = vld [vmem:[%s7224_s2 + $0x58c] ss:$16 sps:$4 sm:$0xff]   ;;  %v4998_v58 = vld [vmem:[%s7224_s2 + $0x580] ss:$16 sps:$4 sm:$0xff]  }
  0x77   :  { %1339 = vmatpush1.bf16.msra.mxu0 %v4906_v59  ;;  %1503 = vmatpush1.bf16.msra.mxu1 %v4909_v60  ;;  %v5001_v59 = vld [vmem:[%s7224_s2 + $0x588] ss:$16 sps:$4 sm:$0xff]   ;;  %v5006_v60 = vld [vmem:[%s7224_s2 + $0x5a4] ss:$16 sps:$4 sm:$0xff]  }
  0x78   :  { %1340 = vmatprep.subr.bf16.mxu0 %v4914_v61  ;;  %1504 = vmatprep.subr.bf16.mxu1 %v4917_v62  ;;  %v5009_v61 = vld [vmem:[%s7224_s2 + $0x5ac] ss:$16 sps:$4 sm:$0xff]   ;;  %v5004_v62 = vld [vmem:[%s7224_s2 + $0x5a0] ss:$16 sps:$4 sm:$0xff]  }
  0x7b   :  { %1341 = vmatpush1.bf16.msra.mxu0 %v4912_v63  ;;  %1505 = vmatpush1.bf16.msra.mxu1 %v4915_v0  ;;  %v5007_v63 = vld [vmem:[%s7224_s2 + $0x5a8] ss:$16 sps:$4 sm:$0xff]   ;;  %v5012_v0 = vld [vmem:[%s7224_s2 + $0x5c4] ss:$16 sps:$4 sm:$0xff]  }
  0x7c   :  { %1342 = vmatprep.subr.bf16.mxu0 %v4920_v1  ;;  %1506 = vmatprep.subr.bf16.mxu1 %v4923_v2  ;;  %v5015_v1 = vld [vmem:[%s7224_s2 + $0x5cc] ss:$16 sps:$4 sm:$0xff]   ;;  %v5010_v2 = vld [vmem:[%s7224_s2 + $0x5c0] ss:$16 sps:$4 sm:$0xff]  }
  0x7f   :  { %1343 = vmatpush1.bf16.msra.mxu0 %v4918_v3  ;;  %1507 = vmatpush1.bf16.msra.mxu1 %v4921_v4  ;;  %v5013_v3 = vld [vmem:[%s7224_s2 + $0x5c8] ss:$16 sps:$4 sm:$0xff]   ;;  %v5018_v4 = vld [vmem:[%s7224_s2 + $0x5e4] ss:$16 sps:$4 sm:$0xff]  }
  0x80   :  { %1353 = vmatprep.subr.bf16.mxu0 %v4928_v5  ;;  %1517 = vmatprep.subr.bf16.mxu1 %v4931_v6  ;;  %v5021_v5 = vld [vmem:[%s7224_s2 + $0x5ec] ss:$16 sps:$4 sm:$0xff]   ;;  %v5016_v6 = vld [vmem:[%s7224_s2 + $0x5e0] ss:$16 sps:$4 sm:$0xff]  }
  0x82   :  { %1345 = vmatmul.mubr.bf16.vlgmr.msra.gmra.mrb[0].mxu0 %v4124_v7  ;;  %1509 = vmatmul.mubr.bf16.vlgmr.msra.gmra.mrb[0].mxu1 %v4124_v7  ;;  %v5019_v7 = vld [vmem:[%s7224_s2 + $0x5e8] ss:$16 sps:$4 sm:$0xff]  }
  0x83   :  { %1354 = vmatpush1.bf16.msra.mxu0 %v4926_v8  ;;  %1518 = vmatpush1.bf16.msra.mxu1 %v4929_v9  ;;  %v5026_v8 = vld [vmem:[%s7224_s2 + $0x604] ss:$16 sps:$4 sm:$0xff]   ;;  %v5024_v9 = vld [vmem:[%s7224_s2 + $0x600] ss:$16 sps:$4 sm:$0xff]  }
  0x84   :  { %1355 = vmatprep.subr.bf16.mxu0 %v4934_v10  ;;  %1519 = vmatprep.subr.bf16.mxu1 %v4937_v12  ;;  %v4126_v10 = vcombine.low %v6005_v11, %v6005_v11  ;;  %v5030_v12 = vld [vmem:[%s7224_s2 + $0x60c] ss:$16 sps:$4 sm:$0xff]   ;;  %v5027_v11 = vld [vmem:[%s7222_s0 + $0x18] ss:$0 sps:$4 sm:$0xff]  }
  0x85   :  { %1385 = vmatprep.mubr.bf16.mxu0 %v4127_v13  ;;  %1549 = vmatprep.mubr.bf16.mxu1 %v4127_v13  ;;  %v5523_v13 = vmov 0  }
  0x87   :  { %1356 = vmatpush1.bf16.msra.mxu0 %v4932_v14  ;;  %1520 = vmatpush1.bf16.msra.mxu1 %v4935_v15  ;;  %v5028_v14 = vld [vmem:[%s7224_s2 + $0x608] ss:$16 sps:$4 sm:$0xff]   ;;  %v5033_v15 = vld [vmem:[%s7226_s4 + $0x4] ss:$8 sps:$4 sm:$0xff]  }
  0x88   :  { %1357 = vmatprep.subr.bf16.mxu0 %v4940_v16  ;;  %1521 = vmatprep.subr.bf16.mxu1 %v4943_v17  ;;  %v5031_v16 = vld [vmem:[%s7226_s4] ss:$8 sps:$4 sm:$0xff]   ;;  %v5036_v17 = vld [vmem:[%s7226_s4 + $0x14] ss:$8 sps:$4 sm:$0xff]  }
  0x8b   :  { %1358 = vmatpush1.bf16.msra.mxu0 %v4938_v18  ;;  %1522 = vmatpush1.bf16.msra.mxu1 %v4941_v19  ;;  %v5034_v18 = vld [vmem:[%s7226_s4 + $0x10] ss:$8 sps:$4 sm:$0xff]   ;;  %v5039_v19 = vld [vmem:[%s7226_s4 + $0x24] ss:$8 sps:$4 sm:$0xff]  }
  0x8c   :  { %1359 = vmatprep.subr.bf16.mxu0 %v4946_v20  ;;  %1523 = vmatprep.subr.bf16.mxu1 %v4949_v21  ;;  %v5037_v20 = vld [vmem:[%s7226_s4 + $0x20] ss:$8 sps:$4 sm:$0xff]   ;;  %v5042_v21 = vld [vmem:[%s7226_s4 + $0x34] ss:$8 sps:$4 sm:$0xff]  }
  0x8f   :  { %1360 = vmatpush1.bf16.msra.mxu0 %v4944_v22  ;;  %1524 = vmatpush1.bf16.msra.mxu1 %v4947_v23  ;;  %v5040_v22 = vld [vmem:[%s7226_s4 + $0x30] ss:$8 sps:$4 sm:$0xff]   ;;  %v5045_v23 = vld [vmem:[%s7226_s4 + $0x44] ss:$8 sps:$4 sm:$0xff]  }
  0x90   :  { %1361 = vmatprep.subr.bf16.mxu0 %v4952_v24  ;;  %1525 = vmatprep.subr.bf16.mxu1 %v4955_v25  ;;  %v5043_v24 = vld [vmem:[%s7226_s4 + $0x40] ss:$8 sps:$4 sm:$0xff]   ;;  %v5048_v25 = vld [vmem:[%s7226_s4 + $0x54] ss:$8 sps:$4 sm:$0xff]  }
  0x93   :  { %1362 = vmatpush1.bf16.msra.mxu0 %v4950_v26  ;;  %1526 = vmatpush1.bf16.msra.mxu1 %v4953_v27  ;;  %v5046_v26 = vld [vmem:[%s7226_s4 + $0x50] ss:$8 sps:$4 sm:$0xff]   ;;  %v5051_v27 = vld [vmem:[%s7226_s4 + $0x64] ss:$8 sps:$4 sm:$0xff]  }
  0x94   :  { %1363 = vmatprep.subr.bf16.mxu0 %v4958_v28  ;;  %1527 = vmatprep.subr.bf16.mxu1 %v4961_v29  ;;  %v5049_v28 = vld [vmem:[%s7226_s4 + $0x60] ss:$8 sps:$4 sm:$0xff]   ;;  %v5054_v29 = vld [vmem:[%s7226_s4 + $0x74] ss:$8 sps:$4 sm:$0xff]  }
  0x97   :  { %1364 = vmatpush1.bf16.msra.mxu0 %v4956_v30  ;;  %1528 = vmatpush1.bf16.msra.mxu1 %v4959_v31  ;;  %v5052_v30 = vld [vmem:[%s7226_s4 + $0x70] ss:$8 sps:$4 sm:$0xff]   ;;  %v5057_v31 = vld [vmem:[%s7226_s4 + $0x84] ss:$8 sps:$4 sm:$0xff]  }
  0x98   :  { %1365 = vmatprep.subr.bf16.mxu0 %v4964_v32  ;;  %1529 = vmatprep.subr.bf16.mxu1 %v4967_v33  ;;  %v5055_v32 = vld [vmem:[%s7226_s4 + $0x80] ss:$8 sps:$4 sm:$0xff]   ;;  %v5060_v33 = vld [vmem:[%s7226_s4 + $0x94] ss:$8 sps:$4 sm:$0xff]  }
  0x9b   :  { %1366 = vmatpush1.bf16.msra.mxu0 %v4962_v34  ;;  %1530 = vmatpush1.bf16.msra.mxu1 %v4965_v35  ;;  %v5058_v34 = vld [vmem:[%s7226_s4 + $0x90] ss:$8 sps:$4 sm:$0xff]   ;;  %v5063_v35 = vld [vmem:[%s7226_s4 + $0xa4] ss:$8 sps:$4 sm:$0xff]  }
  0x9c   :  { %1367 = vmatprep.subr.bf16.mxu0 %v4970_v36  ;;  %1531 = vmatprep.subr.bf16.mxu1 %v4973_v37 }
  0x9f   :  { %1368 = vmatpush1.bf16.msra.mxu0 %v4968_v38  ;;  %1532 = vmatpush1.bf16.msra.mxu1 %v4971_v39 }
  0xa0   :  { %1369 = vmatprep.subr.bf16.mxu0 %v4976_v40  ;;  %1533 = vmatprep.subr.bf16.mxu1 %v4979_v41 }
  0xa3   :  { %1370 = vmatpush1.bf16.msra.mxu0 %v4974_v42  ;;  %1534 = vmatpush1.bf16.msra.mxu1 %v4977_v43 }
  0xa4   :  { %1371 = vmatprep.subr.bf16.mxu0 %v4982_v44  ;;  %1535 = vmatprep.subr.bf16.mxu1 %v4985_v45 }
  0xa7   :  { %1372 = vmatpush1.bf16.msra.mxu0 %v4980_v46  ;;  %1536 = vmatpush1.bf16.msra.mxu1 %v4983_v47 }
  0xa8   :  { %1373 = vmatprep.subr.bf16.mxu0 %v4988_v48  ;;  %1537 = vmatprep.subr.bf16.mxu1 %v4991_v49 }
  0xab   :  { %1374 = vmatpush1.bf16.msra.mxu0 %v4986_v50  ;;  %1538 = vmatpush1.bf16.msra.mxu1 %v4989_v51 }
  0xac   :  { %1375 = vmatprep.subr.bf16.mxu0 %v4994_v52  ;;  %1539 = vmatprep.subr.bf16.mxu1 %v4997_v53 }
  0xaf   :  { %1376 = vmatpush1.bf16.msra.mxu0 %v4992_v54  ;;  %1540 = vmatpush1.bf16.msra.mxu1 %v4995_v55 }
  0xb0   :  { %1377 = vmatprep.subr.bf16.mxu0 %v5000_v56  ;;  %1541 = vmatprep.subr.bf16.mxu1 %v5003_v57 }
  0xb3   :  { %1378 = vmatpush1.bf16.msra.mxu0 %v4998_v58  ;;  %1542 = vmatpush1.bf16.msra.mxu1 %v5001_v59 }
  0xb4   :  { %1379 = vmatprep.subr.bf16.mxu0 %v5006_v60  ;;  %1543 = vmatprep.subr.bf16.mxu1 %v5009_v61 }
  0xb7   :  { %1380 = vmatpush1.bf16.msra.mxu0 %v5004_v62  ;;  %1544 = vmatpush1.bf16.msra.mxu1 %v5007_v63 }
  0xb8   :  { %1381 = vmatprep.subr.bf16.mxu0 %v5012_v0  ;;  %1545 = vmatprep.subr.bf16.mxu1 %v5015_v1 }
  0xbb   :  { %1382 = vmatpush1.bf16.msra.mxu0 %v5010_v2  ;;  %1546 = vmatpush1.bf16.msra.mxu1 %v5013_v3 }
  0xbc   :  { %1383 = vmatprep.subr.bf16.mxu0 %v5018_v4  ;;  %1547 = vmatprep.subr.bf16.mxu1 %v5021_v5 }
  0xbf   :  { %1384 = vmatpush1.bf16.msra.mxu0 %v5016_v6  ;;  %1548 = vmatpush1.bf16.msra.mxu1 %v5019_v7 }
  0xc0   :  { %1394 = vmatprep.subr.bf16.mxu0 %v5026_v8 }
  0xc2   :  { %1386 = vmatmul.mubr.bf16.vlgmr.msra.gmra.mrb[0].mxu0 %v4126_v10  ;;  %1550 = vmatmul.mubr.bf16.vlgmr.msra.gmra.mrb[0].mxu1 %v4126_v10 }
  0xc3   :  { %1395 = vmatpush1.bf16.msra.mxu0 %v5024_v9  ;;  %1426 = vmatprep.mubr.bf16.mxu0 %v5523_v13 }
  0xc4   :  { %1558 = vmatprep.subr.bf16.mxu0 %v5030_v12  ;;  %2198 = vmatprep.mubr.bf16.mxu1 %v5523_v13 }
  0xce   :  { %4325 = vmatmul.mubr.msk.bf16.vlgmr.msra.gmra.mrb[0].mxu0 %vm1267_vm0, %v5027_v11 }
  0xcf   :  { %1559 = vmatpush1.bf16.msra.mxu0 %v5028_v14  ;;  %1590 = vmatprep.mubr.bf16.mxu0 %v5523_v13 }
  0xd0   :  { %2003 = vmatprep.subr.bf16.mxu0 %v5033_v15 }
  0xd6   :  { %4326 = vmatmul.mubr.msk.bf16.vlgmr.msra.gmra.mrb[4].mxu0 %vm1267_vm0, %v5027_v11 }
  0xd7   :  { %2004 = vmatpush1.bf16.msra.mxu0 %v5031_v16 }
  0xd8   :  { %2005 = vmatprep.subr.bf16.mxu0 %v5036_v17 }
  0xdb   :  { %2006 = vmatpush1.bf16.msra.mxu0 %v5034_v18 }
  0xdc   :  { %2007 = vmatprep.subr.bf16.mxu0 %v5039_v19 }
  0xdf   :  { %2008 = vmatpush1.bf16.msra.mxu0 %v5037_v20 }
  0xe0   :  { %2009 = vmatprep.subr.bf16.mxu0 %v5042_v21 }
  0xe3   :  { %2010 = vmatpush1.bf16.msra.mxu0 %v5040_v22 }
  0xe4   :  { %2011 = vmatprep.subr.bf16.mxu0 %v5045_v23 }
  0xe7   :  { %2012 = vmatpush1.bf16.msra.mxu0 %v5043_v24 }
  0xe8   :  { %2013 = vmatprep.subr.bf16.mxu0 %v5048_v25 }
  0xeb   :  { %2014 = vmatpush1.bf16.msra.mxu0 %v5046_v26 }
  0xec   :  { %2015 = vmatprep.subr.bf16.mxu0 %v5051_v27 }
  0xef   :  { %2016 = vmatpush1.bf16.msra.mxu0 %v5049_v28 }
  0xf0   :  { %2017 = vmatprep.subr.bf16.mxu0 %v5054_v29 }
  0xf3   :  { %2018 = vmatpush1.bf16.msra.mxu0 %v5052_v30 }
  0xf4   :  { %2019 = vmatprep.subr.bf16.mxu0 %v5057_v31 }
  0xf7   :  { %2020 = vmatpush1.bf16.msra.mxu0 %v5055_v32 }
  0xf8   :  { %2021 = vmatprep.subr.bf16.mxu0 %v5060_v33 }
  0xf9   :  { %19 = vsyncpa [#allocation5], 0  ;;  %v5061_v36 = vld [vmem:[%s7226_s4 + $0xa0] ss:$8 sps:$4 sm:$0xff]   ;;  %v5066_v37 = vld [vmem:[%s7226_s4 + $0xb4] ss:$8 sps:$4 sm:$0xff]   ;;  %v243_v48 = vlaneseq }
  0xfa   :  { %v5064_v38 = vld [vmem:[%s7226_s4 + $0xb0] ss:$8 sps:$4 sm:$0xff]   ;;  %v5069_v39 = vld [vmem:[%s7226_s4 + $0xc4] ss:$8 sps:$4 sm:$0xff]   ;;  %v5067_v40 = vld [vmem:[%s7226_s4 + $0xc0] ss:$8 sps:$4 sm:$0xff]  }
  0xfb   :  { %2022 = vmatpush1.bf16.msra.mxu0 %v5058_v34  ;;  %v5072_v41 = vld [vmem:[%s7226_s4 + $0xd4] ss:$8 sps:$4 sm:$0xff]   ;;  %v5070_v42 = vld [vmem:[%s7226_s4 + $0xd0] ss:$8 sps:$4 sm:$0xff]   ;;  %v5075_v43 = vld [vmem:[%s7226_s4 + $0xe4] ss:$8 sps:$4 sm:$0xff]  }
  0xfc   :  { %2023 = vmatprep.subr.bf16.mxu0 %v5063_v35  ;;  %v5073_v44 = vld [vmem:[%s7226_s4 + $0xe0] ss:$8 sps:$4 sm:$0xff]   ;;  %v5078_v45 = vld [vmem:[%s7226_s4 + $0xf4] ss:$8 sps:$4 sm:$0xff]   ;;  %v5076_v46 = vld [vmem:[%s7226_s4 + $0xf0] ss:$8 sps:$4 sm:$0xff]  }
  0xfd   :  { %v5081_v47 = vld [vmem:[%s7226_s4 + $0x104] ss:$8 sps:$4 sm:$0xff]   ;;  %v6305_v52 = vshrl.u32 %v243_v48, 7  ;;  %v241_v56 = vld [vmem:[%s7225_s3] sm:$0xf]  ;;  %vm2162_vm1 = vcmask 261120  }
  0xfe   :  { %v5079_v8 = vld [vmem:[%s7226_s4 + $0x100] ss:$8 sps:$4 sm:$0xff]   ;;  %v5084_v12 = vld [vmem:[%s7226_s4 + $0x114] ss:$8 sps:$4 sm:$0xff]   ;;  %v5082_v18 = vld [vmem:[%s7226_s4 + $0x110] ss:$8 sps:$4 sm:$0xff]  }
  0xff   :  { %2024 = vmatpush1.bf16.msra.mxu0 %v5061_v36  ;;  %v6308_v54 = vsub.s32 0, %v6305_v52  ;;  %v6311_v55 = vsub.s32 1, %v6305_v52  ;;  %v6319_v59 = vsub.s32 2, %v6305_v52  ;;  %v6322_v60 = vsub.s32 3, %v6305_v52  ;;  %v5087_v20 = vld [vmem:[%s7226_s4 + $0x124] ss:$8 sps:$4 sm:$0xff]  }
 0x100   :  { %2025 = vmatprep.subr.bf16.mxu0 %v5066_v37  ;;  %v5085_v24 = vld [vmem:[%s7226_s4 + $0x120] ss:$8 sps:$4 sm:$0xff]   ;;  %v5090_v25 = vld [vmem:[%s7226_s4 + $0x134] ss:$8 sps:$4 sm:$0xff]   ;;  %v5088_v26 = vld [vmem:[%s7226_s4 + $0x130] ss:$8 sps:$4 sm:$0xff]  }
 0x101   :  { %v246_v57 = vrot.slane %v241_v56, %v6308_v54  ;;  %v250_v58 = vrot.slane %v241_v56, %v6311_v55  ;;  %v254_v2 = vrot.slane %v241_v56, %v6319_v59  ;;  %v258_v5 = vrot.slane %v241_v56, %v6322_v60  ;;  %v5093_v27 = vld [vmem:[%s7226_s4 + $0x144] ss:$8 sps:$4 sm:$0xff]   ;;  %v5091_v28 = vld [vmem:[%s7226_s4 + $0x140] ss:$8 sps:$4 sm:$0xff]   ;;  %v5096_v29 = vld [vmem:[%s7226_s4 + $0x154] ss:$8 sps:$4 sm:$0xff]  }
 0x102   :  { %v5094_v30 = vld [vmem:[%s7226_s4 + $0x150] ss:$8 sps:$4 sm:$0xff]   ;;  %v5099_v31 = vld [vmem:[%s7226_s4 + $0x164] ss:$8 sps:$4 sm:$0xff]   ;;  %v5097_v32 = vld [vmem:[%s7226_s4 + $0x160] ss:$8 sps:$4 sm:$0xff]  }
 0x103   :  { %2026 = vmatpush1.bf16.msra.mxu0 %v5064_v38  ;;  %v5102_v33 = vld [vmem:[%s7226_s4 + $0x174] ss:$8 sps:$4 sm:$0xff]   ;;  %v5100_v34 = vld [vmem:[%s7226_s4 + $0x170] ss:$8 sps:$4 sm:$0xff]   ;;  %v5105_v35 = vld [vmem:[%s7226_s4 + $0x184] ss:$8 sps:$4 sm:$0xff]  }
 0x104   :  { %2027 = vmatprep.subr.bf16.mxu0 %v5069_v39  ;;  %v5103_v36 = vld [vmem:[%s7226_s4 + $0x180] ss:$8 sps:$4 sm:$0xff]   ;;  %v5108_v37 = vld [vmem:[%s7226_s4 + $0x194] ss:$8 sps:$4 sm:$0xff]   ;;  %v5106_v38 = vld [vmem:[%s7226_s4 + $0x190] ss:$8 sps:$4 sm:$0xff]  }
 0x105   :  { %v5111_v39 = vld [vmem:[%s7226_s4 + $0x1a4] ss:$8 sps:$4 sm:$0xff]   ;;  %v5121_v48 = vld [vmem:[%s7226_s4 + $0x1e0] ss:$8 sps:$4 sm:$0xff]   ;;  %s5524_s27 = smov [#allocation2]   ;;  %s5525_s29 = smov [#allocation4]  }
 0x106   :  { %v5127_v56 = vld [vmem:[%s7228_s6] ss:$16 sps:$4 sm:$0xff]   ;;  %s4098_s28 = sshll.u32 %s5524_s27, 4  ;;  %s4108_s0 = sshll.u32 %s5525_s29, 4  ;;  %s4099_s28 = int_to_ptr.vmem [resolvable:$true] %s4098_s28  ;;  %s4109_s0 = int_to_ptr.vmem [resolvable:$true] %s4108_s0 }
 0x107   :  { %2028 = vmatpush1.bf16.msra.mxu0 %v5067_v40  ;;  %v5109_v40 = vld [vmem:[%s7226_s4 + $0x1a0] ss:$8 sps:$4 sm:$0xff]   ;;  %s5475_s30 = scalar_lea.vmem %s4099_s28, 128  ;;  %p5480_p1 = scmp.lt.s32.totalorder %s4099_s28, %s4099_s28 }
 0x108   :  { %2029 = vmatprep.subr.bf16.mxu0 %v5072_v41  ;;  %v5114_v41 = vld [vmem:[%s7226_s4 + $0x1b4] ss:$8 sps:$4 sm:$0xff]   ;;  %p5476_p0 = scmp.ne.s32.totalorder %s4099_s28, %s5475_s30  ;;  %p5481_p2 = scmp.lt.s32.totalorder %s5475_s30, %s5475_s30 }
 0x10a   :  { %p5482_p3 = por %p5481_p2, %p5480_p1 }
 0x10b   :  { %2030 = vmatpush1.bf16.msra.mxu0 %v5070_v42  ;;  %v5112_v42 = vld [vmem:[%s7226_s4 + $0x1b0] ss:$8 sps:$4 sm:$0xff]  }
 0x10c   :  { %2031 = vmatprep.subr.bf16.mxu0 %v5075_v43  ;;  %v5117_v43 = vld [vmem:[%s7226_s4 + $0x1c4] ss:$8 sps:$4 sm:$0xff]   ;;  %p5483_p4 = pnand %p5482_p3, %p5476_p0 }
 0x10f   :  { %2032 = vmatpush1.bf16.msra.mxu0 %v5073_v44  ;;  %v5115_v44 = vld [vmem:[%s7226_s4 + $0x1c0] ss:$8 sps:$4 sm:$0xff]  }
 0x110   :  { %2033 = vmatprep.subr.bf16.mxu0 %v5078_v45  ;;  %v5120_v45 = vld [vmem:[%s7226_s4 + $0x1d4] ss:$8 sps:$4 sm:$0xff]  }
 0x113   :  { %2034 = vmatpush1.bf16.msra.mxu0 %v5076_v46  ;;  %v5118_v46 = vld [vmem:[%s7226_s4 + $0x1d0] ss:$8 sps:$4 sm:$0xff]  }
 0x114   :  { %2044 = vmatprep.subr.bf16.mxu0 %v5081_v47  ;;  %v5123_v47 = vld [vmem:[%s7226_s4 + $0x1e4] ss:$8 sps:$4 sm:$0xff]  }
 0x195   :  { %v1551_v49 = vpop.f32.mrb[0].mxu1 }
 0x196   :  { %v1553_v50 = vpop.f32.mrb[1].mxu1  ;;  %v4679_v9 = vadd.f32 %v1551_v49, %v254_v2  ;;  %v5126_v49 = vld [vmem:[%s7226_s4 + $0x1f4] ss:$8 sps:$4 sm:$0xff]  }
 0x197   :  { %v1555_v51 = vpop.f32.mrb[2].mxu1  ;;  %v4681_v11 = vadd.f32 %v1553_v50, %v258_v5  ;;  %v5124_v50 = vld [vmem:[%s7226_s4 + $0x1f0] ss:$8 sps:$4 sm:$0xff]   ;;  %v5148_v2 = vld [vmem:[%s7230_s8 + $0x40] ss:$28 sps:$4 sm:$0xff]  }
 0x198   :  { %v1556_v53 = vpop.f32.mrb[3].mxu1  ;;  %v5162_v5 = vld [vmem:[%s7230_s8 + $0xb4] ss:$28 sps:$4 sm:$0xff]  }
 0x1a1   :  { %v1428_v61 = vpop.f32.mrb[0].mxu0 }
 0x1a2   :  { %v4677_v62 = vadd.f32 %v1428_v61, %v246_v57  ;;  %v1430_v63 = vpop.f32.mrb[1].mxu0  ;;  %v5129_v57 = vld [vmem:[%s7228_s6 + $0x4] ss:$16 sps:$4 sm:$0xff]   ;;  %v5130_v61 = vld [vmem:[%s7228_s6 + $0x20] ss:$16 sps:$4 sm:$0xff]  }
 0x1a3   :  { %v4678_v0 = vadd.f32 %v1430_v63, %v250_v58  ;;  %v1432_v1 = vpop.f32.mrb[2].mxu0  ;;  %v5132_v58 = vld [vmem:[%s7228_s6 + $0x24] ss:$16 sps:$4 sm:$0xff]   ;;  %2166 = vmatprep.subr.bf16.mxu1 %v5129_v57 }
 0x1a4   :  { %v1599_v3 = vmax.f32 %v4677_v62, 0.0  ;;  %v1433_v4 = vpop.f32.mrb[3].mxu0  ;;  %2167 = vmatpush1.bf16.msra.mxu1 %v5127_v56  ;;  %v5135_v62 = vld [vmem:[%s7228_s6 + $0xc] ss:$16 sps:$4 sm:$0xff]   ;;  %v5142_v63 = vld [vmem:[%s7230_s8 + $0x8] ss:$28 sps:$4 sm:$0xff]  }
 0x1a5   :  { %v1600_v6 = vmax.f32 %v4678_v0, 0.0  ;;  %2168 = vmatprep.subr.bf16.mxu1 %v5132_v58  ;;  %v5144_v0 = vld [vmem:[%s7230_s8 + $0xc] ss:$28 sps:$4 sm:$0xff]   ;;  %v5150_v1 = vld [vmem:[%s7230_s8 + $0x44] ss:$28 sps:$4 sm:$0xff]  }
 0x1a6   :  { %v1603_v10 = vpack.c.bf16 %v1599_v3, %v1599_v3  ;;  %v5156_v3 = vld [vmem:[%s7230_s8 + $0x7c] ss:$28 sps:$4 sm:$0xff]   ;;  %v5157_v56 = vld [vmem:[%s7230_s8 + $0xa8] ss:$28 sps:$4 sm:$0xff]  }
 0x1a7   :  { %v1604_v7 = vpack.c.bf16 %v1600_v6, %v1600_v6  ;;  %v5154_v4 = vld [vmem:[%s7230_s8 + $0x78] ss:$28 sps:$4 sm:$0xff]   ;;  %v5160_v6 = vld [vmem:[%s7230_s8 + $0xb0] ss:$28 sps:$4 sm:$0xff]   ;;  %v5165_v57 = vld [vmem:[%s7230_s8 + $0xe4] ss:$28 sps:$4 sm:$0xff]  }
 0x1a8   :  { %2169 = vmatpush1.bf16.msra.mxu1 %v5130_v61  ;;  %v5163_v58 = vld [vmem:[%s7230_s8 + $0xe0] ss:$28 sps:$4 sm:$0xff]  }
 0x1a9   :  { %v1592_v14 = vpop.f32.mrb[4].mxu0  ;;  %2035 = vmatprep.mubr.bf16.mxu0 %v1604_v7  ;;  %2207 = vmatprep.subr.bf16.mxu1 %v5135_v62  ;;  %v5168_v7 = vld [vmem:[%s7230_s8 + $0xec] ss:$28 sps:$4 sm:$0xff]   ;;  %v5171_v61 = vld [vmem:[%s7230_s8 + $0x11c] ss:$28 sps:$4 sm:$0xff]  }
 0x1aa   :  { %v6332_v15 = vadd.f32 %v4679_v9, %v1592_v14  ;;  %v1594_v16 = vpop.f32.mrb[5].mxu0  ;;  %2036 = vmatmul.mubr.bf16.vlgmr.msra.gmra.mrb[8].mxu0 %v1603_v10  ;;  %v5174_v9 = vld [vmem:[%s7230_s8 + $0x124] ss:$28 sps:$4 sm:$0xff]   ;;  %v5186_v14 = vld [vmem:[%s7230_s8 + $0x194] ss:$28 sps:$4 sm:$0xff]  }
 0x1ab   :  { %v4682_v17 = vadd.f32 %v4681_v11, %v1594_v16  ;;  %2045 = vmatpush1.bf16.msra.mxu0 %v5079_v8  ;;  %v1596_v19 = vpop.f32.mrb[6].mxu0  ;;  %v5166_v8 = vld [vmem:[%s7230_s8 + $0xe8] ss:$28 sps:$4 sm:$0xff]   ;;  %v5172_v10 = vld [vmem:[%s7230_s8 + $0x120] ss:$28 sps:$4 sm:$0xff]  }
 0x1ac   :  { %2046 = vmatprep.subr.bf16.mxu0 %v5084_v12  ;;  %v1597_v21 = vpop.f32.mrb[7].mxu0  ;;  %v1601_v51 = vmax.f32 %v6332_v15, 0.0  ;;  %v5180_v12 = vld [vmem:[%s7230_s8 + $0x15c] ss:$28 sps:$4 sm:$0xff]   ;;  %v5184_v15 = vld [vmem:[%s7230_s8 + $0x190] ss:$28 sps:$4 sm:$0xff]  }
 0x1ad   :  { %v1602_v22 = vmax.f32 %v4682_v17, 0.0  ;;  %v5178_v11 = vld [vmem:[%s7230_s8 + $0x158] ss:$28 sps:$4 sm:$0xff]   ;;  %v5192_v16 = vld [vmem:[%s7230_s8 + $0x1cc] ss:$28 sps:$4 sm:$0xff]  }
 0x1ae   :  { %v1605_v53 = vpack.c.bf16 %v1601_v51, %v1601_v51  ;;  %v5190_v17 = vld [vmem:[%s7230_s8 + $0x1c8] ss:$28 sps:$4 sm:$0xff]   ;;  %v5196_v19 = vld [vmem:[%s7230_s8 + $0x200] ss:$28 sps:$4 sm:$0xff]   ;;  %v5202_v21 = vld [vmem:[%s7230_s8 + $0x238] ss:$28 sps:$4 sm:$0xff]  }
 0x1af   :  { %v1606_v23 = vpack.c.bf16 %v1602_v22, %v1602_v22  ;;  %2047 = vmatpush1.bf16.msra.mxu0 %v5082_v18  ;;  %v5198_v18 = vld [vmem:[%s7230_s8 + $0x204] ss:$28 sps:$4 sm:$0xff]   ;;  %v5210_v22 = vld [vmem:[%s7230_s8 + $0x274] ss:$28 sps:$4 sm:$0xff]  }
 0x1b0   :  { %2048 = vmatprep.subr.bf16.mxu0 %v5087_v20  ;;  %v5204_v20 = vld [vmem:[%s7230_s8 + $0x23c] ss:$28 sps:$4 sm:$0xff]   ;;  %v5151_v51 = vld [vmem:[%s7230_s8 + $0x70] ss:$28 sps:$4 sm:$0xff]  }
 0x1b1   :  { %2076 = vmatprep.mubr.bf16.mxu0 %v1606_v23  ;;  %v5208_v23 = vld [vmem:[%s7230_s8 + $0x270] ss:$28 sps:$4 sm:$0xff]   ;;  %v5169_v62 = vld [vmem:[%s7230_s8 + $0x118] ss:$28 sps:$4 sm:$0xff]  }
 0x1b3   :  { %2049 = vmatpush1.bf16.msra.mxu0 %v5085_v24  ;;  %v5216_v24 = vld [vmem:[%s7230_s8 + $0x2ac] ss:$28 sps:$4 sm:$0xff]  }
 0x1b4   :  { %2050 = vmatprep.subr.bf16.mxu0 %v5090_v25  ;;  %v5214_v25 = vld [vmem:[%s7230_s8 + $0x2a8] ss:$28 sps:$4 sm:$0xff]  }
 0x1b7   :  { %2051 = vmatpush1.bf16.msra.mxu0 %v5088_v26  ;;  %v5222_v26 = vld [vmem:[%s7230_s8 + $0x2e4] ss:$28 sps:$4 sm:$0xff]  }
 0x1b8   :  { %2052 = vmatprep.subr.bf16.mxu0 %v5093_v27  ;;  %v5220_v27 = vld [vmem:[%s7230_s8 + $0x2e0] ss:$28 sps:$4 sm:$0xff]  }
 0x1bb   :  { %2053 = vmatpush1.bf16.msra.mxu0 %v5091_v28  ;;  %v1671_v28 = vld [vmem:[%s7227_s5] sm:$0x3] }
 0x1bc   :  { %2054 = vmatprep.subr.bf16.mxu0 %v5096_v29  ;;  %v1676_v29 = vrot.slane %v1671_v28, %v6308_v54 }
 0x1bf   :  { %2055 = vmatpush1.bf16.msra.mxu0 %v5094_v30  ;;  %v1680_v30 = vrot.slane %v1671_v28, %v6311_v55 }
 0x1c0   :  { %2056 = vmatprep.subr.bf16.mxu0 %v5099_v31 }
 0x1c3   :  { %2057 = vmatpush1.bf16.msra.mxu0 %v5097_v32 }
 0x1c4   :  { %2058 = vmatprep.subr.bf16.mxu0 %v5102_v33 }
 0x1c7   :  { %2059 = vmatpush1.bf16.msra.mxu0 %v5100_v34 }
 0x1c8   :  { %2060 = vmatprep.subr.bf16.mxu0 %v5105_v35 }
 0x1cb   :  { %2061 = vmatpush1.bf16.msra.mxu0 %v5103_v36 }
 0x1cc   :  { %2062 = vmatprep.subr.bf16.mxu0 %v5108_v37 }
 0x1cf   :  { %2063 = vmatpush1.bf16.msra.mxu0 %v5106_v38 }
 0x1d0   :  { %2064 = vmatprep.subr.bf16.mxu0 %v5111_v39  ;;  %v2088_v39 = vld [vmem:[%s7223_s1] sm:$0xff] }
 0x1d3   :  { %2065 = vmatpush1.bf16.msra.mxu0 %v5109_v40 }
 0x1d4   :  { %2066 = vmatprep.subr.bf16.mxu0 %v5114_v41 }
 0x1d7   :  { %2067 = vmatpush1.bf16.msra.mxu0 %v5112_v42 }
 0x1d8   :  { %2068 = vmatprep.subr.bf16.mxu0 %v5117_v43  ;;  %v5133_v43 = vld [vmem:[%s7228_s6 + $0x8] ss:$16 sps:$4 sm:$0xff]  }
 0x1db   :  { %2069 = vmatpush1.bf16.msra.mxu0 %v5115_v44 }
 0x1dc   :  { %2070 = vmatprep.subr.bf16.mxu0 %v5120_v45  ;;  %v5138_v45 = vld [vmem:[%s7228_s6 + $0x2c] ss:$16 sps:$4 sm:$0xff]  }
 0x1df   :  { %2071 = vmatpush1.bf16.msra.mxu0 %v5118_v46  ;;  %v5136_v46 = vld [vmem:[%s7228_s6 + $0x28] ss:$16 sps:$4 sm:$0xff]  }
 0x1e0   :  { %2072 = vmatprep.subr.bf16.mxu0 %v5123_v47  ;;  %v5141_v47 = vld [vmem:[%s7230_s8 + $0x4] ss:$28 sps:$4 sm:$0xff]  }
 0x1e3   :  { %2073 = vmatpush1.bf16.msra.mxu0 %v5121_v48  ;;  %v5139_v48 = vld [vmem:[%s7230_s8] ss:$28 sps:$4 sm:$0xff]  }
 0x1e4   :  { %2074 = vmatprep.subr.bf16.mxu0 %v5126_v49  ;;  %v5147_v49 = vld [vmem:[%s7230_s8 + $0x3c] ss:$28 sps:$4 sm:$0xff]  }
 0x1e7   :  { %2075 = vmatpush1.bf16.msra.mxu0 %v5124_v50  ;;  %v5153_v50 = vld [vmem:[%s7230_s8 + $0x74] ss:$28 sps:$4 sm:$0xff]  }
 0x1e8   :  { %3783 = vmatprep.subr.bf16.mxu0 %v5144_v0  ;;  %v5175_v0 = vld [vmem:[%s7230_s8 + $0x150] ss:$28 sps:$4 sm:$0xff]  }
 0x1ea   :  { %2077 = vmatmul.mubr.bf16.vlgmr.msra.gmra.mrb[8].mxu0 %v1605_v53  ;;  %v5159_v53 = vld [vmem:[%s7230_s8 + $0xac] ss:$28 sps:$4 sm:$0xff]  }
 0x1eb   :  { %3784 = vmatpush1.bf16.msra.mxu0 %v5142_v63  ;;  %v5177_v63 = vld [vmem:[%s7230_s8 + $0x154] ss:$28 sps:$4 sm:$0xff]  }
 0x1ec   :  { %3785 = vmatprep.subr.bf16.mxu0 %v5150_v1  ;;  %v5183_v1 = vld [vmem:[%s7230_s8 + $0x18c] ss:$28 sps:$4 sm:$0xff]  }
 0x1ef   :  { %3786 = vmatpush1.bf16.msra.mxu0 %v5148_v2  ;;  %v5181_v2 = vld [vmem:[%s7230_s8 + $0x188] ss:$28 sps:$4 sm:$0xff]  }
 0x1f0   :  { %3787 = vmatprep.subr.bf16.mxu0 %v5156_v3  ;;  %v5189_v3 = vld [vmem:[%s7230_s8 + $0x1c4] ss:$28 sps:$4 sm:$0xff]  }
 0x1f3   :  { %3788 = vmatpush1.bf16.msra.mxu0 %v5154_v4  ;;  %v5187_v4 = vld [vmem:[%s7230_s8 + $0x1c0] ss:$28 sps:$4 sm:$0xff]  }
 0x1f4   :  { %3789 = vmatprep.subr.bf16.mxu0 %v5162_v5  ;;  %v5195_v5 = vld [vmem:[%s7230_s8 + $0x1fc] ss:$28 sps:$4 sm:$0xff]  }
 0x1f7   :  { %3790 = vmatpush1.bf16.msra.mxu0 %v5160_v6  ;;  %v5193_v6 = vld [vmem:[%s7230_s8 + $0x1f8] ss:$28 sps:$4 sm:$0xff]  }
 0x1f8   :  { %3791 = vmatprep.subr.bf16.mxu0 %v5168_v7  ;;  %v5201_v7 = vld [vmem:[%s7230_s8 + $0x234] ss:$28 sps:$4 sm:$0xff]  }
 0x1fb   :  { %3792 = vmatpush1.bf16.msra.mxu0 %v5166_v8  ;;  %v5199_v8 = vld [vmem:[%s7230_s8 + $0x230] ss:$28 sps:$4 sm:$0xff]  }
 0x1fc   :  { %3793 = vmatprep.subr.bf16.mxu0 %v5174_v9  ;;  %v5207_v9 = vld [vmem:[%s7230_s8 + $0x26c] ss:$28 sps:$4 sm:$0xff]  }
 0x1ff   :  { %3794 = vmatpush1.bf16.msra.mxu0 %v5172_v10  ;;  %v5205_v10 = vld [vmem:[%s7230_s8 + $0x268] ss:$28 sps:$4 sm:$0xff]  }
 0x200   :  { %3795 = vmatprep.subr.bf16.mxu0 %v5180_v12  ;;  %v5213_v12 = vld [vmem:[%s7230_s8 + $0x2a4] ss:$28 sps:$4 sm:$0xff]  }
 0x203   :  { %3796 = vmatpush1.bf16.msra.mxu0 %v5178_v11  ;;  %v5211_v11 = vld [vmem:[%s7230_s8 + $0x2a0] ss:$28 sps:$4 sm:$0xff]  }
 0x204   :  { %3797 = vmatprep.subr.bf16.mxu0 %v5186_v14  ;;  %v5219_v14 = vld [vmem:[%s7230_s8 + $0x2dc] ss:$28 sps:$4 sm:$0xff]  }
 0x207   :  { %3798 = vmatpush1.bf16.msra.mxu0 %v5184_v15  ;;  %v5217_v15 = vld [vmem:[%s7230_s8 + $0x2d8] ss:$28 sps:$4 sm:$0xff]  }
 0x208   :  { %3799 = vmatprep.subr.bf16.mxu0 %v5192_v16  ;;  %v5225_v16 = vld [vmem:[%s7230_s8 + $0x314] ss:$28 sps:$4 sm:$0xff]  }
 0x20b   :  { %3800 = vmatpush1.bf16.msra.mxu0 %v5190_v17  ;;  %v5228_v17 = vld [vmem:[%s7230_s8 + $0x31c] ss:$28 sps:$4 sm:$0xff]  }
 0x20c   :  { %3801 = vmatprep.subr.bf16.mxu0 %v5198_v18  ;;  %v5223_v18 = vld [vmem:[%s7230_s8 + $0x310] ss:$28 sps:$4 sm:$0xff]  }
 0x20f   :  { %3802 = vmatpush1.bf16.msra.mxu0 %v5196_v19  ;;  %v5226_v19 = vld [vmem:[%s7230_s8 + $0x318] ss:$28 sps:$4 sm:$0xff]  }
 0x210   :  { %3803 = vmatprep.subr.bf16.mxu0 %v5204_v20  ;;  %v5231_v20 = vld [vmem:[%s7230_s8 + $0x34c] ss:$28 sps:$4 sm:$0xff]  }
 0x213   :  { %3804 = vmatpush1.bf16.msra.mxu0 %v5202_v21  ;;  %v5234_v21 = vld [vmem:[%s7230_s8 + $0x354] ss:$28 sps:$4 sm:$0xff]  }
 0x214   :  { %3805 = vmatprep.subr.bf16.mxu0 %v5210_v22  ;;  %v5229_v22 = vld [vmem:[%s7230_s8 + $0x348] ss:$28 sps:$4 sm:$0xff]  }
 0x217   :  { %3806 = vmatpush1.bf16.msra.mxu0 %v5208_v23  ;;  %v5232_v23 = vld [vmem:[%s7230_s8 + $0x350] ss:$28 sps:$4 sm:$0xff]  }
 0x218   :  { %3807 = vmatprep.subr.bf16.mxu0 %v5216_v24  ;;  %v5237_v24 = vld [vmem:[%s7230_s8 + $0x384] ss:$28 sps:$4 sm:$0xff]  }
 0x21b   :  { %3808 = vmatpush1.bf16.msra.mxu0 %v5214_v25  ;;  %v5240_v25 = vld [vmem:[%s7230_s8 + $0x38c] ss:$28 sps:$4 sm:$0xff]  }
 0x21c   :  { %3809 = vmatprep.subr.bf16.mxu0 %v5222_v26  ;;  %v6656_v26 = vld [vmem:[%s7229_s7] sm:$0xf] }
 0x21d   :  { %v2109_v28 = vrot.slane %v6656_v26, %v6311_v55 }
 0x21f   :  { %3810 = vmatpush1.bf16.msra.mxu0 %v5220_v27  ;;  %v2105_v27 = vrot.slane %v6656_v26, %v6308_v54 }
 0x220   :  { %3811 = vmatprep.subr.bf16.mxu0 %v5228_v17  ;;  %v5280_v17 = vld [vmem:[%s7230_s8 + $0x510] ss:$28 sps:$4 sm:$0xff]  }
 0x223   :  { %3812 = vmatpush1.bf16.msra.mxu0 %v5226_v19  ;;  %v5288_v19 = vld [vmem:[%s7230_s8 + $0x54c] ss:$28 sps:$4 sm:$0xff]  }
 0x224   :  { %3813 = vmatprep.subr.bf16.mxu0 %v5234_v21  ;;  %v5286_v21 = vld [vmem:[%s7230_s8 + $0x548] ss:$28 sps:$4 sm:$0xff]  }
 0x227   :  { %3814 = vmatpush1.bf16.msra.mxu0 %v5232_v23  ;;  %v5294_v23 = vld [vmem:[%s7230_s8 + $0x584] ss:$28 sps:$4 sm:$0xff]  }
 0x228   :  { %3824 = vmatprep.subr.bf16.mxu0 %v5240_v25  ;;  %v5292_v25 = vld [vmem:[%s7230_s8 + $0x580] ss:$28 sps:$4 sm:$0xff]  }
 0x2bd   :  { %v2078_v31 = vpop.f32.mrb[8].mxu0 }
 0x2be   :  { %v4683_v32 = vadd.f32 %v2078_v31, %v1676_v29  ;;  %v2080_v33 = vpop.f32.mrb[9].mxu0 }
 0x2bf   :  { %v4684_v34 = vadd.f32 %v2080_v33, %v1680_v30  ;;  %v2082_v35 = vpop.f32.mrb[10].mxu0 }
 0x2c0   :  { %4088 = vst [vmem:[#allocation2] sm:$0xff] %v4683_v32  ;;  %v2083_v36 = vpop.f32.mrb[11].mxu0 }
 0x2c1   :  { %v2085_v37 = vmul.f32 0.5, %v4684_v34  ;;  %4089 = vst [vmem:[#allocation4] sm:$0xff] %v4684_v34 }
 0x2c3   :  { %v2086_v38 = vmul.f32 1.442695, %v2085_v37 }
 0x2c5   :  { %5459 = vpow2.f32 %v2086_v38  ;;  %v5235_v38 = vld [vmem:[%s7230_s8 + $0x380] ss:$28 sps:$4 sm:$0xff]  }
 0x2cf   :  { %v5460_v40 = vpop.eup %5459 }
 0x2d0   :  { %v2089_v41 = vmul.f32 %v5460_v40, %v2088_v39  ;;  %v5238_v39 = vld [vmem:[%s7230_s8 + $0x388] ss:$28 sps:$4 sm:$0xff]   ;;  %v2117_v40 = vrot.slane %v6656_v26, %v6322_v60 }
 0x2d2   :  { %v2090_v42 = vadd.f32 %v4683_v32, %v2089_v41 }
 0x2d4   :  { %v2091_v44 = vpack.c.bf16 %v2090_v42, %v2090_v42  ;;  %v5243_v42 = vld [vmem:[%s7230_s8 + $0x3bc] ss:$28 sps:$4 sm:$0xff]  }
 0x2d6   :  { %4399 = vmatmul.mubr.msk.bf16.vlgmr.msra.gmra.mrb[4].mxu1 %vm2162_vm1, %v2091_v44 }
 0x2d7   :  { %2208 = vmatpush1.bf16.msra.mxu1 %v5133_v43  ;;  %2239 = vmatprep.mubr.bf16.mxu1 %v5523_v13  ;;  %v5145_v13 = vld [vmem:[%s7230_s8 + $0x38] ss:$28 sps:$4 sm:$0xff]   ;;  %v5246_v43 = vld [vmem:[%s7230_s8 + $0x3c4] ss:$28 sps:$4 sm:$0xff]  }
 0x2d8   :  { %2209 = vmatprep.subr.bf16.mxu1 %v5138_v45 }
 0x2db   :  { %2210 = vmatpush1.bf16.msra.mxu1 %v5136_v46 }
 0x2dc   :  { %3701 = vmatprep.subr.bf16.mxu1 %v5141_v47 }
 0x2de   :  { %4400 = vmatmul.mubr.msk.bf16.vlgmr.msra.gmra.mrb[8].mxu1 %vm2162_vm1, %v2091_v44 }
 0x2df   :  { %3702 = vmatpush1.bf16.msra.mxu1 %v5139_v48  ;;  %v5241_v48 = vld [vmem:[%s7230_s8 + $0x3b8] ss:$28 sps:$4 sm:$0xff]  }
 0x2e0   :  { %3703 = vmatprep.subr.bf16.mxu1 %v5147_v49  ;;  %v5244_v49 = vld [vmem:[%s7230_s8 + $0x3c0] ss:$28 sps:$4 sm:$0xff]  }
 0x2e3   :  { %3704 = vmatpush1.bf16.msra.mxu1 %v5145_v13 }
 0x2e4   :  { %3705 = vmatprep.subr.bf16.mxu1 %v5153_v50  ;;  %v5249_v50 = vld [vmem:[%s7230_s8 + $0x3f4] ss:$28 sps:$4 sm:$0xff]  }
 0x2e7   :  { %3706 = vmatpush1.bf16.msra.mxu1 %v5151_v51  ;;  %v5252_v51 = vld [vmem:[%s7230_s8 + $0x3fc] ss:$28 sps:$4 sm:$0xff]  }
 0x2e8   :  { %3707 = vmatprep.subr.bf16.mxu1 %v5159_v53 }
 0x2eb   :  { %3708 = vmatpush1.bf16.msra.mxu1 %v5157_v56 }
 0x2ec   :  { %3709 = vmatprep.subr.bf16.mxu1 %v5165_v57  ;;  %v5247_v57 = vld [vmem:[%s7230_s8 + $0x3f0] ss:$28 sps:$4 sm:$0xff]  }
 0x2ef   :  { %3710 = vmatpush1.bf16.msra.mxu1 %v5163_v58  ;;  %v5250_v58 = vld [vmem:[%s7230_s8 + $0x3f8] ss:$28 sps:$4 sm:$0xff]  }
 0x2f0   :  { %3711 = vmatprep.subr.bf16.mxu1 %v5171_v61  ;;  %v5255_v61 = vld [vmem:[%s7230_s8 + $0x42c] ss:$28 sps:$4 sm:$0xff]  }
 0x2f3   :  { %3712 = vmatpush1.bf16.msra.mxu1 %v5169_v62  ;;  %v5258_v62 = vld [vmem:[%s7230_s8 + $0x434] ss:$28 sps:$4 sm:$0xff]  }
 0x2f4   :  { %3713 = vmatprep.subr.bf16.mxu1 %v5177_v63  ;;  %v5253_v63 = vld [vmem:[%s7230_s8 + $0x428] ss:$28 sps:$4 sm:$0xff]  }
 0x2f7   :  { %3714 = vmatpush1.bf16.msra.mxu1 %v5175_v0  ;;  %v5256_v0 = vld [vmem:[%s7230_s8 + $0x430] ss:$28 sps:$4 sm:$0xff]  }
 0x2f8   :  { %3715 = vmatprep.subr.bf16.mxu1 %v5183_v1  ;;  %v5261_v1 = vld [vmem:[%s7230_s8 + $0x464] ss:$28 sps:$4 sm:$0xff]  }
 0x2fb   :  { %3716 = vmatpush1.bf16.msra.mxu1 %v5181_v2  ;;  %v5264_v2 = vld [vmem:[%s7230_s8 + $0x46c] ss:$28 sps:$4 sm:$0xff]  }
 0x2fc   :  { %3717 = vmatprep.subr.bf16.mxu1 %v5189_v3  ;;  %v5259_v3 = vld [vmem:[%s7230_s8 + $0x460] ss:$28 sps:$4 sm:$0xff]  }
 0x2ff   :  { %3718 = vmatpush1.bf16.msra.mxu1 %v5187_v4  ;;  %v5262_v4 = vld [vmem:[%s7230_s8 + $0x468] ss:$28 sps:$4 sm:$0xff]  }
 0x300   :  { %3719 = vmatprep.subr.bf16.mxu1 %v5195_v5  ;;  %v5267_v5 = vld [vmem:[%s7230_s8 + $0x49c] ss:$28 sps:$4 sm:$0xff]  }
 0x303   :  { %3720 = vmatpush1.bf16.msra.mxu1 %v5193_v6  ;;  %v5270_v6 = vld [vmem:[%s7230_s8 + $0x4a4] ss:$28 sps:$4 sm:$0xff]  }
 0x304   :  { %3721 = vmatprep.subr.bf16.mxu1 %v5201_v7  ;;  %v5265_v7 = vld [vmem:[%s7230_s8 + $0x498] ss:$28 sps:$4 sm:$0xff]  }
 0x307   :  { %3722 = vmatpush1.bf16.msra.mxu1 %v5199_v8  ;;  %v5268_v8 = vld [vmem:[%s7230_s8 + $0x4a0] ss:$28 sps:$4 sm:$0xff]  }
 0x308   :  { %3723 = vmatprep.subr.bf16.mxu1 %v5207_v9  ;;  %v5273_v9 = vld [vmem:[%s7230_s8 + $0x4d4] ss:$28 sps:$4 sm:$0xff]  }
 0x30b   :  { %3724 = vmatpush1.bf16.msra.mxu1 %v5205_v10  ;;  %v5276_v10 = vld [vmem:[%s7230_s8 + $0x4dc] ss:$28 sps:$4 sm:$0xff]  }
 0x30c   :  { %3725 = vmatprep.subr.bf16.mxu1 %v5213_v12  ;;  %v5271_v12 = vld [vmem:[%s7230_s8 + $0x4d0] ss:$28 sps:$4 sm:$0xff]  }
 0x30f   :  { %3726 = vmatpush1.bf16.msra.mxu1 %v5211_v11  ;;  %v5274_v11 = vld [vmem:[%s7230_s8 + $0x4d8] ss:$28 sps:$4 sm:$0xff]  }
 0x310   :  { %3727 = vmatprep.subr.bf16.mxu1 %v5219_v14  ;;  %v5279_v14 = vld [vmem:[%s7230_s8 + $0x50c] ss:$28 sps:$4 sm:$0xff]  }
 0x313   :  { %3728 = vmatpush1.bf16.msra.mxu1 %v5217_v15  ;;  %v5282_v15 = vld [vmem:[%s7230_s8 + $0x514] ss:$28 sps:$4 sm:$0xff]  }
 0x314   :  { %3729 = vmatprep.subr.bf16.mxu1 %v5225_v16  ;;  %v5277_v16 = vld [vmem:[%s7230_s8 + $0x508] ss:$28 sps:$4 sm:$0xff]  }
 0x317   :  { %3730 = vmatpush1.bf16.msra.mxu1 %v5223_v18  ;;  %v5285_v18 = vld [vmem:[%s7230_s8 + $0x544] ss:$28 sps:$4 sm:$0xff]  }
 0x318   :  { %3731 = vmatprep.subr.bf16.mxu1 %v5231_v20  ;;  %v5283_v20 = vld [vmem:[%s7230_s8 + $0x540] ss:$28 sps:$4 sm:$0xff]  }
 0x31b   :  { %3732 = vmatpush1.bf16.msra.mxu1 %v5229_v22  ;;  %v5291_v22 = vld [vmem:[%s7230_s8 + $0x57c] ss:$28 sps:$4 sm:$0xff]  }
 0x31c   :  { %3742 = vmatprep.subr.bf16.mxu1 %v5237_v24  ;;  %v5289_v24 = vld [vmem:[%s7230_s8 + $0x578] ss:$28 sps:$4 sm:$0xff]  }
 0x3a9   :  { %v2200_v29 = vpop.f32.mrb[4].mxu1 }
 0x3aa   :  { %v2201_v30 = vadd.f32 %v2200_v29, %v2105_v27  ;;  %v2202_v31 = vpop.f32.mrb[5].mxu1  ;;  %v5297_v27 = vld [vmem:[%s7230_s8 + $0x5b4] ss:$28 sps:$4 sm:$0xff]  }
 0x3ab   :  { %v2203_v32 = vadd.f32 %v2202_v31, %v2109_v28  ;;  %v2204_v33 = vpop.f32.mrb[6].mxu1  ;;  %v5300_v28 = vld [vmem:[%s7230_s8 + $0x5bc] ss:$28 sps:$4 sm:$0xff]   ;;  %v5295_v29 = vld [vmem:[%s7230_s8 + $0x5b0] ss:$28 sps:$4 sm:$0xff]  }
 0x3ac   :  { %v2248_v34 = vmax.f32 %v2201_v30, 0.0  ;;  %v2205_v35 = vpop.f32.mrb[7].mxu1  ;;  %v5298_v30 = vld [vmem:[%s7230_s8 + $0x5b8] ss:$28 sps:$4 sm:$0xff]   ;;  %v5303_v31 = vld [vmem:[%s7230_s8 + $0x5ec] ss:$28 sps:$4 sm:$0xff]  }
 0x3ad   :  { %v2249_v36 = vmax.f32 %v2203_v32, 0.0  ;;  %v5306_v32 = vld [vmem:[%s7230_s8 + $0x5f4] ss:$28 sps:$4 sm:$0xff]   ;;  %v5301_v33 = vld [vmem:[%s7230_s8 + $0x5e8] ss:$28 sps:$4 sm:$0xff]  }
 0x3ae   :  { %v6672_v41 = vpack.c.bf16 %v2248_v34, %v2248_v34  ;;  %v5304_v34 = vld [vmem:[%s7230_s8 + $0x5f0] ss:$28 sps:$4 sm:$0xff]   ;;  %v5309_v35 = vld [vmem:[%s7230_s8 + $0x624] ss:$28 sps:$4 sm:$0xff]  }
 0x3af   :  { %v6662_v37 = vpack.c.bf16 %v2249_v36, %v2249_v36  ;;  %v5312_v36 = vld [vmem:[%s7230_s8 + $0x62c] ss:$28 sps:$4 sm:$0xff]  }
 0x3b1   :  { %v6680_v44 = vpop.f32.mrb[8].mxu1  ;;  %3733 = vmatprep.mubr.bf16.mxu1 %v6662_v37  ;;  %3815 = vmatprep.mubr.bf16.mxu0 %v6662_v37 }
 0x3b2   :  { %v2243_v45 = vpop.f32.mrb[9].mxu1  ;;  %3734 = vmatmul.mubr.bf16.vlgmr.msra.gmra.mrb[12].mxu1 %v6672_v41  ;;  %3816 = vmatmul.mubr.bf16.vlgmr.msra.gmra.mrb[12].mxu0 %v6672_v41 }
 0x3b3   :  { %v2244_v46 = vadd.f32 %v2243_v45, %v2117_v40  ;;  %3743 = vmatpush1.bf16.msra.mxu1 %v5235_v38  ;;  %3825 = vmatpush1.bf16.msra.mxu0 %v5238_v39  ;;  %v2245_v47 = vpop.f32.mrb[10].mxu1  ;;  %v5307_v38 = vld [vmem:[%s7230_s8 + $0x620] ss:$28 sps:$4 sm:$0xff]   ;;  %v5310_v39 = vld [vmem:[%s7230_s8 + $0x628] ss:$28 sps:$4 sm:$0xff]  }
 0x3b4   :  { %v2246_v13 = vpop.f32.mrb[11].mxu1  ;;  %3744 = vmatprep.subr.bf16.mxu1 %v5243_v42  ;;  %3826 = vmatprep.subr.bf16.mxu0 %v5246_v43  ;;  %v5315_v40 = vld [vmem:[%s7230_s8 + $0x65c] ss:$28 sps:$4 sm:$0xff]   ;;  %v5318_v42 = vld [vmem:[%s7230_s8 + $0x664] ss:$28 sps:$4 sm:$0xff]  }
 0x3b5   :  { %v2251_v53 = vmax.f32 %v2244_v46, 0.0  ;;  %v5313_v43 = vld [vmem:[%s7230_s8 + $0x658] ss:$28 sps:$4 sm:$0xff]   ;;  %v5316_v45 = vld [vmem:[%s7230_s8 + $0x660] ss:$28 sps:$4 sm:$0xff]   ;;  %v2113_v46 = vrot.slane %v6656_v26, %v6319_v59 }
 0x3b6   :  { %v5321_v47 = vld [vmem:[%s7230_s8 + $0x694] ss:$28 sps:$4 sm:$0xff]  }
 0x3b7   :  { %v6698_v56 = vpack.c.bf16 %v2251_v53, %v2251_v53  ;;  %3745 = vmatpush1.bf16.msra.mxu1 %v5241_v48  ;;  %3827 = vmatpush1.bf16.msra.mxu0 %v5244_v49  ;;  %v5324_v48 = vld [vmem:[%s7230_s8 + $0x69c] ss:$28 sps:$4 sm:$0xff]   ;;  %v5319_v49 = vld [vmem:[%s7230_s8 + $0x690] ss:$28 sps:$4 sm:$0xff]   ;;  %v2242_v13 = vadd.f32 %v6680_v44, %v2113_v46  ;;  %v5325_v53 = vld [vmem:[%s7230_s8 + $0x6c8] ss:$28 sps:$4 sm:$0xff]  }
 0x3b8   :  { %3746 = vmatprep.subr.bf16.mxu1 %v5249_v50  ;;  %3828 = vmatprep.subr.bf16.mxu0 %v5252_v51  ;;  %v5322_v26 = vld [vmem:[%s7230_s8 + $0x698] ss:$28 sps:$4 sm:$0xff]   ;;  %v5327_v50 = vld [vmem:[%s7230_s8 + $0x6cc] ss:$28 sps:$4 sm:$0xff]   ;;  %v5389_v46 = vld [vmem:[%s7230_s8 + $0x320] ss:$28 sps:$4 sm:$0xff]  }
 0x3b9   :  { %3774 = vmatprep.mubr.bf16.mxu1 %v6698_v56  ;;  %3856 = vmatprep.mubr.bf16.mxu0 %v6698_v56  ;;  %v5330_v51 = vld [vmem:[%s7230_s8 + $0x6d4] ss:$28 sps:$4 sm:$0xff]  }
 0x3ba   :  { %v5328_v44 = vld [vmem:[%s7230_s8 + $0x6d0] ss:$28 sps:$4 sm:$0xff]  }
 0x3bb   :  { %3747 = vmatpush1.bf16.msra.mxu1 %v5247_v57  ;;  %3829 = vmatpush1.bf16.msra.mxu0 %v5250_v58  ;;  %v2250_v57 = vmax.f32 %v2242_v13, 0.0  ;;  %v5333_v58 = vld [vmem:[%s7230_s8 + $0x14] ss:$28 sps:$4 sm:$0xff]   ;;  %v5400_v13 = vld [vmem:[%s7230_s8 + $0x3cc] ss:$28 sps:$4 sm:$0xff]  }
 0x3bc   :  { %3748 = vmatprep.subr.bf16.mxu1 %v5255_v61  ;;  %3830 = vmatprep.subr.bf16.mxu0 %v5258_v62  ;;  %v5334_v61 = vld [vmem:[%s7230_s8 + $0x1d8] ss:$28 sps:$4 sm:$0xff]   ;;  %v5331_v62 = vld [vmem:[%s7230_s8 + $0x10] ss:$28 sps:$4 sm:$0xff]  }
 0x3bf   :  { %3749 = vmatpush1.bf16.msra.mxu1 %v5253_v63  ;;  %3831 = vmatpush1.bf16.msra.mxu0 %v5256_v0  ;;  %v6876_v63 = vpack.c.bf16 %v2250_v57, %v2250_v57  ;;  %v5335_v0 = vld [vmem:[%s7230_s8 + $0x18] ss:$28 sps:$4 sm:$0xff]  }
 0x3c0   :  { %3750 = vmatprep.subr.bf16.mxu1 %v5261_v1  ;;  %3832 = vmatprep.subr.bf16.mxu0 %v5264_v2  ;;  %v5338_v1 = vld [vmem:[%s7230_s8 + $0x4c] ss:$28 sps:$4 sm:$0xff]   ;;  %v5409_v57 = vld [vmem:[%s7230_s8 + $0x474] ss:$28 sps:$4 sm:$0xff]  }
 0x3c1   :  { %v5339_v2 = vld [vmem:[%s7230_s8 + $0x210] ss:$28 sps:$4 sm:$0xff]  }
 0x3c3   :  { %3751 = vmatpush1.bf16.msra.mxu1 %v5259_v3  ;;  %3833 = vmatpush1.bf16.msra.mxu0 %v5262_v4  ;;  %v5336_v3 = vld [vmem:[%s7230_s8 + $0x48] ss:$28 sps:$4 sm:$0xff]   ;;  %v5340_v4 = vld [vmem:[%s7230_s8 + $0x50] ss:$28 sps:$4 sm:$0xff]  }
 0x3c4   :  { %3752 = vmatprep.subr.bf16.mxu1 %v5267_v5  ;;  %3834 = vmatprep.subr.bf16.mxu0 %v5270_v6  ;;  %v5343_v5 = vld [vmem:[%s7230_s8 + $0x84] ss:$28 sps:$4 sm:$0xff]  }
 0x3c5   :  { %v5344_v6 = vld [vmem:[%s7230_s8 + $0x248] ss:$28 sps:$4 sm:$0xff]  }
 0x3c7   :  { %3753 = vmatpush1.bf16.msra.mxu1 %v5265_v7  ;;  %3835 = vmatpush1.bf16.msra.mxu0 %v5268_v8  ;;  %v5341_v7 = vld [vmem:[%s7230_s8 + $0x80] ss:$28 sps:$4 sm:$0xff]  }
 0x3c8   :  { %3754 = vmatprep.subr.bf16.mxu1 %v5273_v9  ;;  %3836 = vmatprep.subr.bf16.mxu0 %v5276_v10  ;;  %v5348_v8 = vld [vmem:[%s7230_s8 + $0xbc] ss:$28 sps:$4 sm:$0xff]  }
 0x3c9   :  { %v5349_v9 = vld [vmem:[%s7230_s8 + $0x280] ss:$28 sps:$4 sm:$0xff]   ;;  %v5346_v10 = vld [vmem:[%s7230_s8 + $0xb8] ss:$28 sps:$4 sm:$0xff]  }
 0x3cb   :  { %3755 = vmatpush1.bf16.msra.mxu1 %v5271_v12  ;;  %3837 = vmatpush1.bf16.msra.mxu0 %v5274_v11  ;;  %v5350_v12 = vld [vmem:[%s7230_s8 + $0xc0] ss:$28 sps:$4 sm:$0xff]   ;;  %v5353_v11 = vld [vmem:[%s7230_s8 + $0xf4] ss:$28 sps:$4 sm:$0xff]  }
 0x3cc   :  { %3756 = vmatprep.subr.bf16.mxu1 %v5279_v14  ;;  %3838 = vmatprep.subr.bf16.mxu0 %v5282_v15  ;;  %v5354_v14 = vld [vmem:[%s7230_s8 + $0x2b8] ss:$28 sps:$4 sm:$0xff]   ;;  %v5351_v15 = vld [vmem:[%s7230_s8 + $0xf0] ss:$28 sps:$4 sm:$0xff]  }
 0x3cf   :  { %3757 = vmatpush1.bf16.msra.mxu1 %v5277_v16  ;;  %3839 = vmatpush1.bf16.msra.mxu0 %v5280_v17  ;;  %v5355_v16 = vld [vmem:[%s7230_s8 + $0xf8] ss:$28 sps:$4 sm:$0xff]   ;;  %v5358_v17 = vld [vmem:[%s7230_s8 + $0x12c] ss:$28 sps:$4 sm:$0xff]  }
 0x3d0   :  { %3758 = vmatprep.subr.bf16.mxu1 %v5285_v18  ;;  %3840 = vmatprep.subr.bf16.mxu0 %v5288_v19  ;;  %v5359_v18 = vld [vmem:[%s7230_s8 + $0x2f0] ss:$28 sps:$4 sm:$0xff]   ;;  %v5356_v19 = vld [vmem:[%s7230_s8 + $0x128] ss:$28 sps:$4 sm:$0xff]  }
 0x3d3   :  { %3759 = vmatpush1.bf16.msra.mxu1 %v5283_v20  ;;  %3841 = vmatpush1.bf16.msra.mxu0 %v5286_v21  ;;  %v5360_v20 = vld [vmem:[%s7230_s8 + $0x130] ss:$28 sps:$4 sm:$0xff]   ;;  %v5363_v21 = vld [vmem:[%s7230_s8 + $0x164] ss:$28 sps:$4 sm:$0xff]  }
 0x3d4   :  { %3760 = vmatprep.subr.bf16.mxu1 %v5291_v22  ;;  %3842 = vmatprep.subr.bf16.mxu0 %v5294_v23  ;;  %v5364_v22 = vld [vmem:[%s7230_s8 + $0x328] ss:$28 sps:$4 sm:$0xff]   ;;  %v5361_v23 = vld [vmem:[%s7230_s8 + $0x160] ss:$28 sps:$4 sm:$0xff]  }
 0x3d7   :  { %3761 = vmatpush1.bf16.msra.mxu1 %v5289_v24  ;;  %3843 = vmatpush1.bf16.msra.mxu0 %v5292_v25  ;;  %v5365_v24 = vld [vmem:[%s7230_s8 + $0x168] ss:$28 sps:$4 sm:$0xff]   ;;  %v5368_v25 = vld [vmem:[%s7230_s8 + $0x19c] ss:$28 sps:$4 sm:$0xff]  }
 0x3d8   :  { %3762 = vmatprep.subr.bf16.mxu1 %v5297_v27  ;;  %3844 = vmatprep.subr.bf16.mxu0 %v5300_v28  ;;  %v5369_v27 = vld [vmem:[%s7230_s8 + $0x360] ss:$28 sps:$4 sm:$0xff]   ;;  %v5366_v28 = vld [vmem:[%s7230_s8 + $0x198] ss:$28 sps:$4 sm:$0xff]  }
 0x3db   :  { %3763 = vmatpush1.bf16.msra.mxu1 %v5295_v29  ;;  %3845 = vmatpush1.bf16.msra.mxu0 %v5298_v30  ;;  %v5370_v29 = vld [vmem:[%s7230_s8 + $0x1a0] ss:$28 sps:$4 sm:$0xff]   ;;  %v5373_v30 = vld [vmem:[%s7230_s8 + $0x1d4] ss:$28 sps:$4 sm:$0xff]  }
 0x3dc   :  { %3764 = vmatprep.subr.bf16.mxu1 %v5303_v31  ;;  %3846 = vmatprep.subr.bf16.mxu0 %v5306_v32  ;;  %v5371_v31 = vld [vmem:[%s7230_s8 + $0x1d0] ss:$28 sps:$4 sm:$0xff]  }
 0x3dd   :  { %v5376_v32 = vld [vmem:[%s7230_s8 + $0x20c] ss:$28 sps:$4 sm:$0xff]  }
 0x3df   :  { %3765 = vmatpush1.bf16.msra.mxu1 %v5301_v33  ;;  %3847 = vmatpush1.bf16.msra.mxu0 %v5304_v34  ;;  %v5374_v33 = vld [vmem:[%s7230_s8 + $0x208] ss:$28 sps:$4 sm:$0xff]  }
 0x3e0   :  { %3766 = vmatprep.subr.bf16.mxu1 %v5309_v35  ;;  %3848 = vmatprep.subr.bf16.mxu0 %v5312_v36  ;;  %v5379_v34 = vld [vmem:[%s7230_s8 + $0x244] ss:$28 sps:$4 sm:$0xff]   ;;  %v5382_v36 = vld [vmem:[%s7230_s8 + $0x27c] ss:$28 sps:$4 sm:$0xff]  }
 0x3e1   :  { %v5377_v35 = vld [vmem:[%s7230_s8 + $0x240] ss:$28 sps:$4 sm:$0xff]  }
 0x3e3   :  { %3767 = vmatpush1.bf16.msra.mxu1 %v5307_v38  ;;  %3849 = vmatpush1.bf16.msra.mxu0 %v5310_v39  ;;  %v5380_v38 = vld [vmem:[%s7230_s8 + $0x278] ss:$28 sps:$4 sm:$0xff]  }
 0x3e4   :  { %3768 = vmatprep.subr.bf16.mxu1 %v5315_v40  ;;  %3850 = vmatprep.subr.bf16.mxu0 %v5318_v42  ;;  %v5385_v39 = vld [vmem:[%s7230_s8 + $0x2b4] ss:$28 sps:$4 sm:$0xff]   ;;  %v5388_v42 = vld [vmem:[%s7230_s8 + $0x2ec] ss:$28 sps:$4 sm:$0xff]  }
 0x3e5   :  { %v5383_v40 = vld [vmem:[%s7230_s8 + $0x2b0] ss:$28 sps:$4 sm:$0xff]  }
 0x3e7   :  { %3769 = vmatpush1.bf16.msra.mxu1 %v5313_v43  ;;  %3851 = vmatpush1.bf16.msra.mxu0 %v5316_v45  ;;  %v5386_v43 = vld [vmem:[%s7230_s8 + $0x2e8] ss:$28 sps:$4 sm:$0xff]  }
 0x3e8   :  { %3770 = vmatprep.subr.bf16.mxu1 %v5321_v47  ;;  %3852 = vmatprep.subr.bf16.mxu0 %v5324_v48  ;;  %v5391_v45 = vld [vmem:[%s7230_s8 + $0x324] ss:$28 sps:$4 sm:$0xff]   ;;  %v5394_v47 = vld [vmem:[%s7230_s8 + $0x35c] ss:$28 sps:$4 sm:$0xff]  }
 0x3e9   :  { %v5392_v48 = vld [vmem:[%s7230_s8 + $0x358] ss:$28 sps:$4 sm:$0xff]  }
 0x3eb   :  { %3771 = vmatpush1.bf16.msra.mxu1 %v5319_v49  ;;  %3853 = vmatpush1.bf16.msra.mxu0 %v5322_v26  ;;  %v5397_v49 = vld [vmem:[%s7230_s8 + $0x394] ss:$28 sps:$4 sm:$0xff]  }
 0x3ec   :  { %3772 = vmatprep.subr.bf16.mxu1 %v5327_v50  ;;  %3854 = vmatprep.subr.bf16.mxu0 %v5330_v51  ;;  %v5395_v26 = vld [vmem:[%s7230_s8 + $0x390] ss:$28 sps:$4 sm:$0xff]   ;;  %v5398_v50 = vld [vmem:[%s7230_s8 + $0x3c8] ss:$28 sps:$4 sm:$0xff]  }
 0x3ed   :  { %v5403_v51 = vld [vmem:[%s7230_s8 + $0x404] ss:$28 sps:$4 sm:$0xff]  }
 0x3ef   :  { %3773 = vmatpush1.bf16.msra.mxu1 %v5325_v53  ;;  %3855 = vmatpush1.bf16.msra.mxu0 %v5328_v44  ;;  %v5401_v53 = vld [vmem:[%s7230_s8 + $0x400] ss:$28 sps:$4 sm:$0xff]   ;;  %v5404_v44 = vld [vmem:[%s7230_s8 + $0x438] ss:$28 sps:$4 sm:$0xff]  }
 0x3f0   :  { %3865 = vmatprep.subr.bf16.mxu1 %v5333_v58  ;;  %4633 = vmatprep.subr.bf16.mxu0 %v5334_v61  ;;  %v5407_v58 = vld [vmem:[%s7230_s8 + $0x470] ss:$28 sps:$4 sm:$0xff]  }
 0x3f1   :  { %v5412_v61 = vld [vmem:[%s7230_s8 + $0x4ac] ss:$28 sps:$4 sm:$0xff]  }
 0x3f2   :  { %3775 = vmatmul.mubr.bf16.vlgmr.msra.gmra.mrb[12].mxu1 %v6876_v63  ;;  %3857 = vmatmul.mubr.bf16.vlgmr.msra.gmra.mrb[12].mxu0 %v6876_v63 }
 0x3f3   :  { %3866 = vmatpush1.bf16.msra.mxu1 %v5331_v62  ;;  %3897 = vmatprep.mubr.bf16.mxu1 %v6662_v37  ;;  %v5410_v62 = vld [vmem:[%s7230_s8 + $0x4a8] ss:$28 sps:$4 sm:$0xff]  }
 0x3f4   :  { %4634 = vmatpush3.bf16.msra.mxu0 %v5335_v0  ;;  %3979 = vmatprep.mubr.bf16.mxu0 %v6662_v37  ;;  %v5345_v37 = vld [vmem:[%s7230_s8 + $0x88] ss:$28 sps:$4 sm:$0xff]  }
 0x3f5   :  { %3867 = vmatprep.subr.bf16.mxu1 %v5338_v1  ;;  %4635 = vmatprep.subr.bf16.mxu0 %v5339_v2  ;;  %v5415_v0 = vld [vmem:[%s7230_s8 + $0x4e4] ss:$28 sps:$4 sm:$0xff]   ;;  %v5418_v2 = vld [vmem:[%s7230_s8 + $0x51c] ss:$28 sps:$4 sm:$0xff]  }
 0x3f6   :  { %v5413_v1 = vld [vmem:[%s7230_s8 + $0x4e0] ss:$28 sps:$4 sm:$0xff]  }
 0x3f7   :  { %3868 = vmatpush1.bf16.msra.mxu1 %v5336_v3  ;;  %v5416_v3 = vld [vmem:[%s7230_s8 + $0x518] ss:$28 sps:$4 sm:$0xff]  }
 0x3f8   :  { %4636 = vmatpush3.bf16.msra.mxu0 %v5340_v4  ;;  %3869 = vmatprep.subr.bf16.mxu1 %v5343_v5  ;;  %v5421_v4 = vld [vmem:[%s7230_s8 + $0x554] ss:$28 sps:$4 sm:$0xff]  }
 0x3f9   :  { %4637 = vmatprep.subr.bf16.mxu0 %v5344_v6  ;;  %v5419_v5 = vld [vmem:[%s7230_s8 + $0x550] ss:$28 sps:$4 sm:$0xff]  }
 0x3fa   :  { %v5424_v6 = vld [vmem:[%s7230_s8 + $0x58c] ss:$28 sps:$4 sm:$0xff]  }
 0x3fb   :  { %3870 = vmatpush1.bf16.msra.mxu1 %v5341_v7  ;;  %v5422_v7 = vld [vmem:[%s7230_s8 + $0x588] ss:$28 sps:$4 sm:$0xff]  }
 0x3fc   :  { %4638 = vmatpush3.bf16.msra.mxu0 %v5345_v37  ;;  %3871 = vmatprep.subr.bf16.mxu1 %v5348_v8  ;;  %v5427_v37 = vld [vmem:[%s7230_s8 + $0x5c4] ss:$28 sps:$4 sm:$0xff]  }
 0x3fd   :  { %4639 = vmatprep.subr.bf16.mxu0 %v5349_v9  ;;  %v5425_v8 = vld [vmem:[%s7230_s8 + $0x5c0] ss:$28 sps:$4 sm:$0xff]  }
 0x3fe   :  { %v5430_v9 = vld [vmem:[%s7230_s8 + $0x5fc] ss:$28 sps:$4 sm:$0xff]  }
 0x3ff   :  { %3872 = vmatpush1.bf16.msra.mxu1 %v5346_v10  ;;  %v5428_v10 = vld [vmem:[%s7230_s8 + $0x5f8] ss:$28 sps:$4 sm:$0xff]  }
 0x400   :  { %4640 = vmatpush3.bf16.msra.mxu0 %v5350_v12  ;;  %3873 = vmatprep.subr.bf16.mxu1 %v5353_v11  ;;  %v5433_v12 = vld [vmem:[%s7230_s8 + $0x634] ss:$28 sps:$4 sm:$0xff]  }
 0x401   :  { %4641 = vmatprep.subr.bf16.mxu0 %v5354_v14  ;;  %v5431_v11 = vld [vmem:[%s7230_s8 + $0x630] ss:$28 sps:$4 sm:$0xff]  }
 0x402   :  { %v5436_v14 = vld [vmem:[%s7230_s8 + $0x66c] ss:$28 sps:$4 sm:$0xff]  }
 0x403   :  { %3874 = vmatpush1.bf16.msra.mxu1 %v5351_v15  ;;  %v5434_v15 = vld [vmem:[%s7230_s8 + $0x668] ss:$28 sps:$4 sm:$0xff]  }
 0x404   :  { %4642 = vmatpush3.bf16.msra.mxu0 %v5355_v16  ;;  %3875 = vmatprep.subr.bf16.mxu1 %v5358_v17  ;;  %v5439_v16 = vld [vmem:[%s7230_s8 + $0x6a4] ss:$28 sps:$4 sm:$0xff]  }
 0x405   :  { %4643 = vmatprep.subr.bf16.mxu0 %v5359_v18  ;;  %v5437_v17 = vld [vmem:[%s7230_s8 + $0x6a0] ss:$28 sps:$4 sm:$0xff]  }
 0x406   :  { %v5442_v18 = vld [vmem:[%s7230_s8 + $0x6dc] ss:$28 sps:$4 sm:$0xff]  }
 0x407   :  { %3876 = vmatpush1.bf16.msra.mxu1 %v5356_v19  ;;  %v5440_v19 = vld [vmem:[%s7230_s8 + $0x6d8] ss:$28 sps:$4 sm:$0xff]  }
 0x408   :  { %4644 = vmatpush3.bf16.msra.mxu0 %v5360_v20  ;;  %3877 = vmatprep.subr.bf16.mxu1 %v5363_v21  ;;  %v5443_v20 = vld [vmem:[%s7230_s8 + $0x558] ss:$28 sps:$4 sm:$0xff]  }
 0x409   :  { %4645 = vmatprep.subr.bf16.mxu0 %v5364_v22  ;;  %v5444_v21 = vld [vmem:[%s7230_s8 + $0x398] ss:$28 sps:$4 sm:$0xff]   ;;  %v5445_v22 = vld [vmem:[%s7230_s8 + $0x590] ss:$28 sps:$4 sm:$0xff]  }
 0x40b   :  { %3878 = vmatpush1.bf16.msra.mxu1 %v5361_v23  ;;  %v5446_v23 = vld [vmem:[%s7230_s8 + $0x3d0] ss:$28 sps:$4 sm:$0xff]  }
 0x40c   :  { %4646 = vmatpush3.bf16.msra.mxu0 %v5365_v24  ;;  %3879 = vmatprep.subr.bf16.mxu1 %v5368_v25  ;;  %v5447_v24 = vld [vmem:[%s7230_s8 + $0x5c8] ss:$28 sps:$4 sm:$0xff]  }
 0x40d   :  { %4647 = vmatprep.subr.bf16.mxu0 %v5369_v27  ;;  %v5448_v25 = vld [vmem:[%s7230_s8 + $0x408] ss:$28 sps:$4 sm:$0xff]   ;;  %v5449_v27 = vld [vmem:[%s7230_s8 + $0x600] ss:$28 sps:$4 sm:$0xff]  }
 0x40f   :  { %3880 = vmatpush1.bf16.msra.mxu1 %v5366_v28  ;;  %v5451_v28 = vld [vmem:[%s7230_s8 + $0x638] ss:$28 sps:$4 sm:$0xff]  }
 0x410   :  { %4648 = vmatpush3.bf16.msra.mxu0 %v5370_v29  ;;  %3881 = vmatprep.subr.bf16.mxu1 %v5373_v30  ;;  %v5452_v29 = vld [vmem:[%s7230_s8 + $0x478] ss:$28 sps:$4 sm:$0xff]   ;;  %v5453_v30 = vld [vmem:[%s7230_s8 + $0x670] ss:$28 sps:$4 sm:$0xff]  }
 0x413   :  { %3980 = vmatmul.mubr.bf16.vlgmr.msra.gmra.mrb[16].mxu0 %v6672_v41  ;;  %3882 = vmatpush1.bf16.msra.mxu1 %v5371_v31  ;;  %v5454_v31 = vld [vmem:[%s7230_s8 + $0x4b0] ss:$28 sps:$4 sm:$0xff]  }
 0x414   :  { %3883 = vmatprep.subr.bf16.mxu1 %v5376_v32  ;;  %v5455_v32 = vld [vmem:[%s7230_s8 + $0x6a8] ss:$28 sps:$4 sm:$0xff]  }
 0x417   :  { %3884 = vmatpush1.bf16.msra.mxu1 %v5374_v33  ;;  %v5456_v33 = vld [vmem:[%s7230_s8 + $0x4e8] ss:$28 sps:$4 sm:$0xff]  }
 0x418   :  { %3885 = vmatprep.subr.bf16.mxu1 %v5379_v34  ;;  %v5457_v34 = vld [vmem:[%s7230_s8 + $0x6e0] ss:$28 sps:$4 sm:$0xff]  }
 0x41b   :  { %3886 = vmatpush1.bf16.msra.mxu1 %v5377_v35  ;;  %v5458_v35 = vld [vmem:[%s7230_s8 + $0x520] ss:$28 sps:$4 sm:$0xff]  }
 0x41c   :  { %3887 = vmatprep.subr.bf16.mxu1 %v5382_v36  ;;  %v7170_v36 = vld [vmem:[%s7231_s9] sm:$0xff] }
 0x41f   :  { %3888 = vmatpush1.bf16.msra.mxu1 %v5380_v38  ;;  %v2517_v38 = vrot.slane %v7170_v36, %v6308_v54 }
 0x420   :  { %3889 = vmatprep.subr.bf16.mxu1 %v5385_v39  ;;  %v2525_v39 = vrot.slane %v7170_v36, %v6319_v59 }
 0x423   :  { %3890 = vmatpush1.bf16.msra.mxu1 %v5383_v40  ;;  %v2521_v40 = vrot.slane %v7170_v36, %v6311_v55 }
 0x424   :  { %3891 = vmatprep.subr.bf16.mxu1 %v5388_v42  ;;  %v2529_v42 = vrot.slane %v7170_v36, %v6322_v60 }
 0x427   :  { %3892 = vmatpush1.bf16.msra.mxu1 %v5386_v43 }
 0x428   :  { %3893 = vmatprep.subr.bf16.mxu1 %v5391_v45 }
 0x42b   :  { %3894 = vmatpush1.bf16.msra.mxu1 %v5389_v46 }
 0x42c   :  { %3895 = vmatprep.subr.bf16.mxu1 %v5394_v47 }
 0x42f   :  { %3896 = vmatpush1.bf16.msra.mxu1 %v5392_v48 }
 0x430   :  { %3906 = vmatprep.subr.bf16.mxu1 %v5397_v49 }
 0x432   :  { %3898 = vmatmul.mubr.bf16.vlgmr.msra.gmra.mrb[16].mxu1 %v6672_v41  ;;  %v5406_v41 = vld [vmem:[%s7230_s8 + $0x43c] ss:$28 sps:$4 sm:$0xff]  }
 0x433   :  { %3907 = vmatpush1.bf16.msra.mxu1 %v5395_v26  ;;  %3938 = vmatprep.mubr.bf16.mxu1 %v6698_v56 }
 0x434   :  { %3908 = vmatprep.subr.bf16.mxu1 %v5400_v13 }
 0x437   :  { %3909 = vmatpush1.bf16.msra.mxu1 %v5398_v50 }
 0x438   :  { %3910 = vmatprep.subr.bf16.mxu1 %v5403_v51 }
 0x43b   :  { %3911 = vmatpush1.bf16.msra.mxu1 %v5401_v53 }
 0x43c   :  { %3912 = vmatprep.subr.bf16.mxu1 %v5406_v41 }
 0x43f   :  { %3913 = vmatpush1.bf16.msra.mxu1 %v5404_v44 }
 0x440   :  { %3914 = vmatprep.subr.bf16.mxu1 %v5409_v57 }
 0x443   :  { %3915 = vmatpush1.bf16.msra.mxu1 %v5407_v58 }
 0x444   :  { %3916 = vmatprep.subr.bf16.mxu1 %v5412_v61 }
 0x447   :  { %3917 = vmatpush1.bf16.msra.mxu1 %v5410_v62 }
 0x448   :  { %3918 = vmatprep.subr.bf16.mxu1 %v5415_v0 }
 0x44b   :  { %3919 = vmatpush1.bf16.msra.mxu1 %v5413_v1 }
 0x44c   :  { %3920 = vmatprep.subr.bf16.mxu1 %v5418_v2 }
 0x44f   :  { %3921 = vmatpush1.bf16.msra.mxu1 %v5416_v3 }
 0x450   :  { %3922 = vmatprep.subr.bf16.mxu1 %v5421_v4 }
 0x453   :  { %3923 = vmatpush1.bf16.msra.mxu1 %v5419_v5 }
 0x454   :  { %3924 = vmatprep.subr.bf16.mxu1 %v5424_v6 }
 0x457   :  { %3925 = vmatpush1.bf16.msra.mxu1 %v5422_v7 }
 0x458   :  { %3926 = vmatprep.subr.bf16.mxu1 %v5427_v37 }
 0x45b   :  { %3927 = vmatpush1.bf16.msra.mxu1 %v5425_v8 }
 0x45c   :  { %3928 = vmatprep.subr.bf16.mxu1 %v5430_v9 }
 0x45f   :  { %3929 = vmatpush1.bf16.msra.mxu1 %v5428_v10 }
 0x460   :  { %3930 = vmatprep.subr.bf16.mxu1 %v5433_v12 }
 0x463   :  { %3931 = vmatpush1.bf16.msra.mxu1 %v5431_v11 }
 0x464   :  { %3932 = vmatprep.subr.bf16.mxu1 %v5436_v14 }
 0x467   :  { %3933 = vmatpush1.bf16.msra.mxu1 %v5434_v15 }
 0x468   :  { %3934 = vmatprep.subr.bf16.mxu1 %v5439_v16 }
 0x46b   :  { %3935 = vmatpush1.bf16.msra.mxu1 %v5437_v17 }
 0x46c   :  { %3936 = vmatprep.subr.bf16.mxu1 %v5442_v18 }
 0x46f   :  { %3937 = vmatpush1.bf16.msra.mxu1 %v5440_v19 }
 0x470   :  { %4655 = vmatprep.subr.bf16.mxu1 %v5443_v20 }
 0x472   :  { %3939 = vmatmul.mubr.bf16.vlgmr.msra.gmra.mrb[16].mxu1 %v6876_v63 }
 0x473   :  { %4656 = vmatpush3.bf16.msra.mxu1 %v5444_v21  ;;  %4019 = vmatprep.mubr.bf16.mxu1 %v6698_v56  ;;  %v5450_v56 = vld [vmem:[%s7230_s8 + $0x440] ss:$28 sps:$4 sm:$0xff]  }
 0x474   :  { %4657 = vmatprep.subr.bf16.mxu1 %v5445_v22 }
 0x477   :  { %4658 = vmatpush3.bf16.msra.mxu1 %v5446_v23 }
 0x478   :  { %4659 = vmatprep.subr.bf16.mxu1 %v5447_v24 }
 0x47b   :  { %4660 = vmatpush3.bf16.msra.mxu1 %v5448_v25 }
 0x47c   :  { %4661 = vmatprep.subr.bf16.mxu1 %v5449_v27 }
 0x47f   :  { %4662 = vmatpush3.bf16.msra.mxu1 %v5450_v56 }
 0x480   :  { %4663 = vmatprep.subr.bf16.mxu1 %v5451_v28 }
 0x483   :  { %4664 = vmatpush3.bf16.msra.mxu1 %v5452_v29 }
 0x484   :  { %4665 = vmatprep.subr.bf16.mxu1 %v5453_v30 }
 0x487   :  { %4666 = vmatpush3.bf16.msra.mxu1 %v5454_v31 }
 0x488   :  { %4667 = vmatprep.subr.bf16.mxu1 %v5455_v32 }
 0x48b   :  { %4668 = vmatpush3.bf16.msra.mxu1 %v5456_v33 }
 0x48c   :  { %4669 = vmatprep.subr.bf16.mxu1 %v5457_v34 }
 0x48f   :  { %4670 = vmatpush3.bf16.msra.mxu1 %v5458_v35 }
 0x492   :  { %4020 = vmatmul.mubr.bf16.vlgmr.msra.gmra.mrb[20].mxu1 %v6876_v63 }
 0x4c5   :  { %v3776_v43 = vpop.f32.mrb[12].mxu1  ;;  %v3858_v45 = vpop.f32.mrb[12].mxu0 }
 0x4c6   :  { %v4685_v63 = vadd.f32 %v3776_v43, %v2517_v38  ;;  %v4687_v46 = vadd.f32 %v3858_v45, %v2525_v39  ;;  %v3778_v47 = vpop.f32.mrb[13].mxu1  ;;  %v3860_v48 = vpop.f32.mrb[13].mxu0 }
 0x4c7   :  { %v4686_v49 = vadd.f32 %v3778_v47, %v2521_v40  ;;  %v4688_v26 = vadd.f32 %v3860_v48, %v2529_v42  ;;  %v3780_v13 = vpop.f32.mrb[14].mxu1  ;;  %v3862_v50 = vpop.f32.mrb[14].mxu0 }
 0x4c8   :  { %v4027_v54 = vmul.f32 0.5, %v4685_v63  ;;  %v4029_v51 = vmul.f32 0.5, %v4687_v46  ;;  %v3781_v53 = vpop.f32.mrb[15].mxu1  ;;  %v3863_v59 = vpop.f32.mrb[15].mxu0 }
 0x4c9   :  { %v4028_v41 = vmul.f32 0.5, %v4686_v49  ;;  %v4030_v44 = vmul.f32 0.5, %v4688_v26 }
 0x4ca   :  { %5461 = vtanh.f32 %v4027_v54 }
 0x4cb   :  { %5463 = vtanh.f32 %v4029_v51 }
 0x4cc   :  { %5465 = vtanh.f32 %v4028_v41 }
 0x4cd   :  { %5467 = vtanh.f32 %v4030_v44 }
 0x4d4   :  { %v5462_v55 = vpop.eup %5461 }
 0x4d5   :  { %v5464_v60 = vpop.eup %5463  ;;  %v4041_v57 = vadd.f32 1.0, %v5462_v55 }
 0x4d6   :  { %v5466_v58 = vpop.eup %5465  ;;  %v4043_v61 = vadd.f32 1.0, %v5464_v60 }
 0x4d7   :  { %v5468_v62 = vpop.eup %5467  ;;  %v4048_v0 = vmul.f32 0.5, %v4041_v57  ;;  %v4042_v1 = vadd.f32 1.0, %v5466_v58 }
 0x4d8   :  { %v4050_v2 = vmul.f32 0.5, %v4043_v61  ;;  %v4044_v3 = vadd.f32 1.0, %v5468_v62 }
 0x4d9   :  { %v4049_v4 = vmul.f32 0.5, %v4042_v1 }
 0x4da   :  { %v4051_v5 = vmul.f32 0.5, %v4044_v3 }
 0x4db   :  { %v4629_v6 = vpack.c.bf16 %v4049_v4, %v4048_v0 }
 0x4dc   :  { %v4630_v7 = vpack.c.bf16 %v4051_v5, %v4050_v2 }
 0x4dd   :  { %4084 = vst [vmem:[%s7232_s10] sm:$0xff] %v4629_v6 }
 0x4de   :  { %4085 = vst [vmem:[%s7232_s10 + $0x8] sm:$0xff] %v4630_v7 }
 0x4e6   :  { %v4649_v37 = vpop.f32.mrb[16].mxu0 }
 0x4e7   :  { %v4650_v8 = vpop.f32.mrb[17].mxu0 }
 0x4e8   :  { %v4651_v9 = vadd.f32 %v4650_v8, %v4649_v37  ;;  %v4652_v10 = vpop.f32.mrb[18].mxu0 }
 0x4e9   :  { %v4653_v12 = vpop.f32.mrb[19].mxu0 }
 0x4ea   :  { %5486 = shalt.err (!%p5483_p4)
}
 0x4eb   :  { %s5487_s13 = scalar_lea.hbm %s7233_s11, 128 }
 0x4ec   :  { %p5488_p5 = scmp.ne.s32.totalorder %s7233_s11, %s5487_s13  ;;  %p5491_p6 = scmp.lt.u32.totalorder %s5487_s13, %s7233_s11 }
 0x4ee   :  { %p5493_p7 = pnand %p5491_p6, %p5488_p5 }
 0x4f0   :  { %5496 = shalt.err (!%p5493_p7)
}
 0x4f1   :  { %4101 = dma.vmem_to_hbm [thread:$0]  %s4099_s28, 128, %s7233_s11, [#allocation3]  }
 0x4f2   :  { %s5497_s18 = scalar_lea.vmem %s4109_s0, 128  ;;  %p5502_p9 = scmp.lt.s32.totalorder %s4109_s0, %s4109_s0 }
 0x4f3   :  { %p5498_p8 = scmp.ne.s32.totalorder %s4109_s0, %s5497_s18  ;;  %p5503_p10 = scmp.lt.s32.totalorder %s5497_s18, %s5497_s18 }
 0x4f5   :  { %p5504_p11 = por %p5503_p10, %p5502_p9 }
 0x4f7   :  { %p5505_p12 = pnand %p5504_p11, %p5498_p8 }
 0x4f9   :  { %5508 = shalt.err (!%p5505_p12)
}
 0x4fa   :  { %s5509_s20 = scalar_lea.hbm %s7234_s12, 128 }
 0x4fb   :  { %p5510_p13 = scmp.ne.s32.totalorder %s7234_s12, %s5509_s20  ;;  %p5513_p0 = scmp.lt.u32.totalorder %s5509_s20, %s7234_s12 }
 0x4fd   :  { %p5515_p1 = pnand %p5513_p0, %p5510_p13 }
 0x4ff   :  { %5518 = shalt.err (!%p5515_p1)
}
 0x500   :  { %4111 = dma.vmem_to_hbm [thread:$0]  %s4109_s0, 128, %s7234_s12, [#allocation5]   ;;  %v2532_v11 = vsub.s32 4, %v6305_v52  ;;  %v2536_v14 = vsub.s32 5, %v6305_v52  ;;  %v2540_v32 = vsub.s32 6, %v6305_v52 }
 0x502   :  { %v2533_v15 = vrot.slane %v7170_v36, %v2532_v11  ;;  %v2537_v16 = vrot.slane %v7170_v36, %v2536_v14  ;;  %v2541_v33 = vrot.slane %v7170_v36, %v2540_v32 }
 0x504   :  { %v3982_v38 = vadd.f32 %v4651_v9, %v2541_v33 }
 0x545   :  { %v3940_v17 = vpop.f32.mrb[16].mxu1 }
 0x546   :  { %v4689_v18 = vadd.f32 %v3940_v17, %v2533_v15  ;;  %v3942_v19 = vpop.f32.mrb[17].mxu1 }
 0x547   :  { %v4690_v20 = vadd.f32 %v3942_v19, %v2537_v16  ;;  %v3944_v21 = vpop.f32.mrb[18].mxu1 }
 0x548   :  { %v4031_v22 = vmul.f32 0.5, %v4689_v18  ;;  %v3945_v23 = vpop.f32.mrb[19].mxu1 }
 0x549   :  { %v4032_v24 = vmul.f32 0.5, %v4690_v20 }
 0x54a   :  { %5469 = vtanh.f32 %v4031_v22 }
 0x54b   :  { %5471 = vtanh.f32 %v4032_v24 }
 0x554   :  { %v5470_v25 = vpop.eup %5469 }
 0x555   :  { %v5472_v27 = vpop.eup %5471  ;;  %v4045_v56 = vadd.f32 1.0, %v5470_v25 }
 0x556   :  { %v4046_v28 = vadd.f32 1.0, %v5472_v27 }
 0x557   :  { %v4052_v29 = vmul.f32 0.5, %v4045_v56 }
 0x558   :  { %v4053_v30 = vmul.f32 0.5, %v4046_v28 }
 0x55a   :  { %v4631_v31 = vpack.c.bf16 %v4053_v30, %v4052_v29 }
 0x55c   :  { %4086 = vst [vmem:[%s7232_s10 + $0x10] sm:$0xff] %v4631_v31 }
 0x565   :  { %v4671_v34 = vpop.f32.mrb[20].mxu1 }
 0x566   :  { %v4672_v35 = vpop.f32.mrb[21].mxu1 }
 0x567   :  { %v4673_v39 = vadd.f32 %v4672_v35, %v4671_v34  ;;  %v4674_v40 = vpop.f32.mrb[22].mxu1 }
 0x568   :  { %v4675_v42 = vpop.f32.mrb[23].mxu1 }
 0x569   :  { %v4022_v43 = vadd.f32 %v4673_v39, %v3982_v38 }
 0x56b   :  { %v4033_v45 = vmul.f32 0.5, %v4022_v43 }
 0x56d   :  { %5473 = vtanh.f32 %v4033_v45 }
 0x577   :  { %v5474_v63 = vpop.eup %5473 }
 0x578   :  { %v4047_v46 = vadd.f32 1.0, %v5474_v63 }
 0x57a   :  { %v4054_v47 = vmul.f32 0.5, %v4047_v46 }
 0x57c   :  { %v4632_v48 = vpack.c.bf16 %v4054_v47, %v4054_v47 }
 0x57e   :  { %4087 = vst [vmem:[%s7232_s10 + $0x18] sm:$0xf] %v4632_v48 }
 0x57f   :  { %5519 = dma.done.wait [#allocation3], 128  }
 0x580   :  { %5520 = vsyncadd [#allocation3], 4294967168 }
 0x581   :  { %5521 = dma.done.wait [#allocation5], 128  }
 0x582   :  { %5522 = vsyncadd [#allocation5], 4294967168 }
 0x583   :  { %4120 = vsyncpa [#allocation3], 1 }
 0x584   :  { %4121 = vsyncpa [#allocation5], 1 }

</bundles_post_ra>
